<compile_context>
chip_gen: v7x
topology: tpu7x:2x2x1
jax: 0.10.0
libtpu: 0.0.40
codegen_flags: <defaults>
</compile_context>

<pallas_src>
import functools

import jax
import jax.numpy as jnp
from jax import lax
from jax.experimental import pallas as pl
from jax.experimental.pallas import tpu as pltpu


def _round_up(x, m):
    return ((x + m - 1) // m) * m


def _biconv_kernel(adj_f_ref, adj_r_ref, yf_ref, yr_ref, x_ref,
                   wself_ref, bias_ref, out_ref, acc_ref):
    """Grid = (row_tiles, k_tiles); k is the reduction axis (last)."""
    k = pl.program_id(1)
    f_out = yf_ref.shape[1]

    @pl.when(k == 0)
    def _init():
        # Fused self term + bias initializes the accumulator:
        #   X_i @ [W_self_fwd | W_self_rev] + [b_fwd | b_rev]  -> [TM, 2*F_out]
        acc_ref[...] = (
            jnp.dot(x_ref[...], wself_ref[...],
                    preferred_element_type=jnp.float32)
            + bias_ref[...])

    # forward direction: out_fwd[i_blk] += Adj[i_blk, k_blk] @ Yf[k_blk]
    acc_ref[:, :f_out] += jnp.dot(
        adj_f_ref[...], yf_ref[...], preferred_element_type=jnp.float32)

    # reverse direction (edge_index[[1,0]] <=> Adj^T):
    #   out_rev[i_blk] += Adj[k_blk, i_blk]^T @ Yr[k_blk]
    # adj_r_ref holds the (k_blk, i_blk) tile of the SAME adjacency array, so
    # we contract dim 0 of both operands (no transposed copy is ever built).
    acc_ref[:, f_out:] += lax.dot_general(
        adj_r_ref[...], yr_ref[...],
        dimension_numbers=(((0,), (0,)), ((), ())),
        preferred_element_type=jnp.float32)

    @pl.when(k == pl.num_programs(1) - 1)
    def _finalize():
        out_ref[...] = acc_ref[...].astype(out_ref.dtype)


def biconv_forward(x, edge_index, params, *, block=512):
    """x: [N, F_in] f32, edge_index: [2, E] int32, params: dict of weights.

    Returns [N, 2*F_out] with fwd features in [:, :F_out], rev in [:, F_out:].
    `block` tiles the node axis (rows and the reduction axis); must be a
    multiple of 128.
    """
    assert block % 128 == 0
    n, f_in = x.shape
    f_out = params["w_self_fwd"].shape[1]

    block = min(block, _round_up(n, 128))
    n_pad = _round_up(n, block)

    # --- glue: densify edge_index into Adj[dst, src] at padded size ---------
    src, dst = edge_index[0], edge_index[1]
    adj_bf16 = (
        jnp.zeros((n_pad, n_pad), jnp.float32)
        .at[dst, src].add(1.0)
        .astype(jnp.bfloat16))

    x_p = jnp.pad(x, ((0, n_pad - n), (0, 0))) if n_pad != n else x

    # Reassociated neighbor projections (cheap, done once, before the O(N^2)
    # aggregation matmuls). f32 accumulation happens inside the kernel.
    yf = jnp.dot(x_p, params["w_neigh_fwd"]).astype(jnp.bfloat16)
    yr = jnp.dot(x_p, params["w_neigh_rev"]).astype(jnp.bfloat16)

    # Fused self-term weights / bias for one lane-dense [TM, 2*F_out] matmul.
    w_self = jnp.concatenate([params["w_self_fwd"], params["w_self_rev"]], axis=1)
    bias = jnp.concatenate([params["b_fwd"], params["b_rev"]], axis=1)

    n_tiles = n_pad // block

    out = pl.pallas_call(
        _biconv_kernel,
        out_shape=jax.ShapeDtypeStruct((n_pad, 2 * f_out), jnp.float32),
        grid_spec=pltpu.PrefetchScalarGridSpec(
            num_scalar_prefetch=0,
            grid=(n_tiles, n_tiles),
            in_specs=[
                # adj tile (i, k) for the forward direction
                pl.BlockSpec((block, block), lambda i, k: (i, k)),
                # SAME adj array, tile (k, i), for the reverse direction
                pl.BlockSpec((block, block), lambda i, k: (k, i)),
                # projected features, indexed by the reduction block k
                pl.BlockSpec((block, f_out), lambda i, k: (k, 0)),
                pl.BlockSpec((block, f_out), lambda i, k: (k, 0)),
                # raw features for the self term, indexed by the row block i
                pl.BlockSpec((block, f_in), lambda i, k: (i, 0)),
                # fused self weights / bias (constant index => fetched once)
                pl.BlockSpec((f_in, 2 * f_out), lambda i, k: (0, 0)),
                pl.BlockSpec((1, 2 * f_out), lambda i, k: (0, 0)),
            ],
            out_specs=pl.BlockSpec((block, 2 * f_out), lambda i, k: (i, 0)),
            scratch_shapes=[pltpu.VMEM((block, 2 * f_out), jnp.float32)],
        ),
        compiler_params=pltpu.CompilerParams(
            dimension_semantics=("parallel", "arbitrary"),
            vmem_limit_bytes=64 * 1024 * 1024,
        ),
    )(adj_bf16, adj_bf16, yf, yr, x_p, w_self, bias)

    return out[:n]


def init_params(key, f_in, f_out):
    """Deterministic glorot-style init for the two independent convs."""
    ks = jax.random.split(key, 6)
    scale = (6.0 / (f_in + f_out)) ** 0.5
    g = lambda k: jax.random.uniform(k, (f_in, f_out), jnp.float32, -scale, scale)
    return {
        "w_self_fwd": g(ks[0]),
        "w_neigh_fwd": g(ks[1]),
        "b_fwd": 0.01 * jax.random.normal(ks[2], (1, f_out), jnp.float32),
        "w_self_rev": g(ks[3]),
        "w_neigh_rev": g(ks[4]),
        "b_rev": 0.01 * jax.random.normal(ks[5], (1, f_out), jnp.float32),
    }


def reference_forward(x, edge_index, params):
    """Pure-JAX (f32) reference of BiConv(GraphConv) for a sanity check."""
    n = x.shape[0]
    adj = jnp.zeros((n, n), jnp.float32).at[edge_index[1], edge_index[0]].add(1.0)
    fwd = x @ params["w_self_fwd"] + (adj @ x) @ params["w_neigh_fwd"] + params["b_fwd"]
    rev = x @ params["w_self_rev"] + (adj.T @ x) @ params["w_neigh_rev"] + params["b_rev"]
    return jnp.concatenate([fwd, rev], axis=1)


if __name__ == "__main__":
    key = jax.random.PRNGKey(0)
    k_x, k_p = jax.random.split(key)

    # Small but non-trivial: N pads to 256, block=128 => a real 2x2 grid.
    # F_OUT=64 => 2*F_out = 128 lane-dense output slab.
    N, F_IN, F_OUT = 200, 64, 64

    x = jax.random.normal(k_x, (N, F_IN), dtype=jnp.float32)

    # deterministic edge set: a ring plus a few skip edges
    ring_src = jnp.arange(N, dtype=jnp.int32)
    ring_dst = (ring_src + 1) % N
    skip_src = jnp.array([0, 7, 19, 42, 63, 99, 128, 177], dtype=jnp.int32)
    skip_dst = jnp.array([50, 120, 3, 180, 11, 9, 64, 33], dtype=jnp.int32)
    edge_index = jnp.stack(
        [jnp.concatenate([ring_src, skip_src]),
         jnp.concatenate([ring_dst, skip_dst])], axis=0)

    params = init_params(k_p, F_IN, F_OUT)

    fwd = jax.jit(functools.partial(biconv_forward, block=128))
    out = jax.block_until_ready(fwd(x, edge_index, params))

    ref = reference_forward(x, edge_index, params)
    assert out.shape == (N, 2 * F_OUT)
    max_err = float(jnp.max(jnp.abs(out - ref)))
    # bf16 adjacency / projections => loose-ish tolerance vs pure-f32 reference
    assert jnp.allclose(out, ref, atol=5e-2, rtol=5e-2), f"max abs err {max_err}"

    print("KERNEL_OK")
</pallas_src>

<mosaic_0001>
module attributes {stable_mosaic.version = 11 : i64} {
  func.func private @main(%arg0: i32) attributes {dimension_semantics = [#tpu.dimension_semantics<core_parallel>], iteration_bounds = array<i64: 2>, tpu.core_type = #tpu.core_type<sc_scalar_subcore>, window_params = []} {
    return
  }
}

module attributes {stable_mosaic.version = 11 : i64} {
  func.func private @main(%arg0: i32) attributes {dimension_semantics = [#tpu.dimension_semantics<core_parallel>], iteration_bounds = array<i64: 2>, tpu.core_type = #tpu.core_type<sc_scalar_subcore>, window_params = []} {
    return
  }
}

module attributes {stable_mosaic.version = 11 : i64} {
  func.func @_biconv_kernel(%arg0: i32, %arg1: i32, %arg2: memref<128x128xbf16, #tpu.memory_space<vmem>>, %arg3: memref<128x128xbf16, #tpu.memory_space<vmem>>, %arg4: memref<128x64xbf16, #tpu.memory_space<vmem>>, %arg5: memref<128x64xbf16, #tpu.memory_space<vmem>>, %arg6: memref<128x64xf32, #tpu.memory_space<vmem>>, %arg7: memref<64x128xf32, #tpu.memory_space<vmem>>, %arg8: memref<1x128xf32, #tpu.memory_space<vmem>>, %arg9: memref<128x128xf32, #tpu.memory_space<vmem>>, %arg10: memref<128x128xf32, #tpu.memory_space<vmem>>) attributes {dimension_semantics = [#tpu.dimension_semantics<parallel>, #tpu.dimension_semantics<arbitrary>], iteration_bounds = array<i64: 2, 2>, scalar_prefetch = 0 : i64, scratch_operands = 1 : i64, tpu.core_type = #tpu.core_type<tc>, window_params = [{transform_indices = @transform_0, window_bounds = array<i64: 128, 128>}, {transform_indices = @transform_1, window_bounds = array<i64: 128, 128>}, {transform_indices = @transform_2, window_bounds = array<i64: 128, 64>}, {transform_indices = @transform_3, window_bounds = array<i64: 128, 64>}, {transform_indices = @transform_4, window_bounds = array<i64: 128, 64>}, {pipeline_mode = #tpu.pipeline_mode<synchronous>, transform_indices = @transform_5, window_bounds = array<i64: 64, 128>}, {pipeline_mode = #tpu.pipeline_mode<synchronous>, transform_indices = @transform_6, window_bounds = array<i64: 1, 128>}, {transform_indices = @transform_7, window_bounds = array<i64: 128, 128>}]} {
    %c0_i32 = arith.constant 0 : i32
    %0 = arith.cmpi eq, %arg1, %c0_i32 : i32
    %1 = arith.extui %0 : i1 to i32
    %c0_i32_0 = arith.constant 0 : i32
    %2 = arith.cmpi ne, %1, %c0_i32_0 : i32
    scf.if %2 {
      %c0_17 = arith.constant 0 : index
      %c0_18 = arith.constant 0 : index
      %18 = vector.load %arg6[%c0_17, %c0_18] : memref<128x64xf32, #tpu.memory_space<vmem>>, vector<128x64xf32>
      %c0_19 = arith.constant 0 : index
      %c0_20 = arith.constant 0 : index
      %19 = vector.load %arg7[%c0_19, %c0_20] : memref<64x128xf32, #tpu.memory_space<vmem>>, vector<64x128xf32>
      %cst_21 = arith.constant dense<0.000000e+00> : vector<128x128xf32>
      %20 = tpu.matmul %18, %19, %cst_21 {dimension_numbers = #tpu.dot_dimension_numbers<[1], [0], [0], [1], [0, 0, 1, 1], [], []>} : vector<128x64xf32>, vector<64x128xf32>, vector<128x128xf32> -> vector<128x128xf32>
      %c0_22 = arith.constant 0 : index
      %c0_23 = arith.constant 0 : index
      %21 = vector.load %arg8[%c0_22, %c0_23] : memref<1x128xf32, #tpu.memory_space<vmem>>, vector<1x128xf32>
      %22 = vector.broadcast %21 : vector<1x128xf32> to vector<128x128xf32>
      %23 = arith.addf %20, %22 : vector<128x128xf32>
      %c0_24 = arith.constant 0 : index
      %c0_25 = arith.constant 0 : index
      %24 = vector.load %arg10[%c0_24, %c0_25] : memref<128x128xf32, #tpu.memory_space<vmem>>, vector<128x128xf32>
      tpu.vector_store %arg10[%c0_24, %c0_25], %23 {strides = array<i32>} : memref<128x128xf32, #tpu.memory_space<vmem>>, vector<128x128xf32>,
    } else {
    }
    %c0 = arith.constant 0 : index
    %c0_1 = arith.constant 0 : index
    %3 = vector.load %arg10[%c0, %c0_1] : memref<128x128xf32, #tpu.memory_space<vmem>>, vector<128x64xf32>
    %c0_2 = arith.constant 0 : index
    %c0_3 = arith.constant 0 : index
    %4 = vector.load %arg2[%c0_2, %c0_3] : memref<128x128xbf16, #tpu.memory_space<vmem>>, vector<128x128xbf16>
    %c0_4 = arith.constant 0 : index
    %c0_5 = arith.constant 0 : index
    %5 = vector.load %arg4[%c0_4, %c0_5] : memref<128x64xbf16, #tpu.memory_space<vmem>>, vector<128x64xbf16>
    %cst = arith.constant dense<0.000000e+00> : vector<128x64xf32>
    %6 = tpu.matmul %4, %5, %cst {dimension_numbers = #tpu.dot_dimension_numbers<[1], [0], [0], [1], [0, 0, 1, 1], [], []>} : vector<128x128xbf16>, vector<128x64xbf16>, vector<128x64xf32> -> vector<128x64xf32>
    %7 = arith.addf %3, %6 : vector<128x64xf32>
    %c0_6 = arith.constant 0 : index
    %c0_7 = arith.constant 0 : index
    %8 = vector.load %arg10[%c0_6, %c0_7] : memref<128x128xf32, #tpu.memory_space<vmem>>, vector<128x64xf32>
    tpu.vector_store %arg10[%c0_6, %c0_7], %7 {strides = array<i32>} : memref<128x128xf32, #tpu.memory_space<vmem>>, vector<128x64xf32>,
    %c0_8 = arith.constant 0 : index
    %c64 = arith.constant 64 : index
    %9 = vector.load %arg10[%c0_8, %c64] : memref<128x128xf32, #tpu.memory_space<vmem>>, vector<128x64xf32>
    %c0_9 = arith.constant 0 : index
    %c0_10 = arith.constant 0 : index
    %10 = vector.load %arg3[%c0_9, %c0_10] : memref<128x128xbf16, #tpu.memory_space<vmem>>, vector<128x128xbf16>
    %c0_11 = arith.constant 0 : index
    %c0_12 = arith.constant 0 : index
    %11 = vector.load %arg5[%c0_11, %c0_12] : memref<128x64xbf16, #tpu.memory_space<vmem>>, vector<128x64xbf16>
    %cst_13 = arith.constant dense<0.000000e+00> : vector<128x64xf32>
    %12 = tpu.matmul %10, %11, %cst_13 {dimension_numbers = #tpu.dot_dimension_numbers<[0], [0], [1], [1], [0, 1, 1, 1], [], []>} : vector<128x128xbf16>, vector<128x64xbf16>, vector<128x64xf32> -> vector<128x64xf32>
    %13 = arith.addf %9, %12 : vector<128x64xf32>
    %c0_14 = arith.constant 0 : index
    %c64_15 = arith.constant 64 : index
    %14 = vector.load %arg10[%c0_14, %c64_15] : memref<128x128xf32, #tpu.memory_space<vmem>>, vector<128x64xf32>
    tpu.vector_store %arg10[%c0_14, %c64_15], %13 {strides = array<i32>} : memref<128x128xf32, #tpu.memory_space<vmem>>, vector<128x64xf32>,
    %c1_i32 = arith.constant 1 : i32
    %15 = arith.cmpi eq, %arg1, %c1_i32 : i32
    %16 = arith.extui %15 : i1 to i32
    %c0_i32_16 = arith.constant 0 : i32
    %17 = arith.cmpi ne, %16, %c0_i32_16 : i32
    scf.if %17 {
      %c0_17 = arith.constant 0 : index
      %c0_18 = arith.constant 0 : index
      %18 = vector.load %arg10[%c0_17, %c0_18] : memref<128x128xf32, #tpu.memory_space<vmem>>, vector<128x128xf32>
      %c0_19 = arith.constant 0 : index
      %c0_20 = arith.constant 0 : index
      %19 = vector.load %arg9[%c0_19, %c0_20] : memref<128x128xf32, #tpu.memory_space<vmem>>, vector<128x128xf32>
      tpu.vector_store %arg9[%c0_19, %c0_20], %18 {strides = array<i32>} : memref<128x128xf32, #tpu.memory_space<vmem>>, vector<128x128xf32>,
    } else {
    }
    return
  }
  func.func @transform_0(%arg0: i32, %arg1: i32) -> (i32, i32) {
    %c0_i32 = arith.constant 0 : i32
    return %arg0, %arg1 : i32, i32
  }
  func.func @transform_1(%arg0: i32, %arg1: i32) -> (i32, i32) {
    %c0_i32 = arith.constant 0 : i32
    return %arg1, %arg0 : i32, i32
  }
  func.func @transform_2(%arg0: i32, %arg1: i32) -> (i32, i32) {
    %c0_i32 = arith.constant 0 : i32
    %c0_i32_0 = arith.constant 0 : i32
    return %arg1, %c0_i32 : i32, i32
  }
  func.func @transform_3(%arg0: i32, %arg1: i32) -> (i32, i32) {
    %c0_i32 = arith.constant 0 : i32
    %c0_i32_0 = arith.constant 0 : i32
    return %arg1, %c0_i32 : i32, i32
  }
  func.func @transform_4(%arg0: i32, %arg1: i32) -> (i32, i32) {
    %c0_i32 = arith.constant 0 : i32
    %c0_i32_0 = arith.constant 0 : i32
    return %arg0, %c0_i32 : i32, i32
  }
  func.func @transform_5(%arg0: i32, %arg1: i32) -> (i32, i32) {
    %c0_i32 = arith.constant 0 : i32
    %c0_i32_0 = arith.constant 0 : i32
    %c0_i32_1 = arith.constant 0 : i32
    return %c0_i32, %c0_i32_0 : i32, i32
  }
  func.func @transform_6(%arg0: i32, %arg1: i32) -> (i32, i32) {
    %c0_i32 = arith.constant 0 : i32
    %c0_i32_0 = arith.constant 0 : i32
    %c0_i32_1 = arith.constant 0 : i32
    return %c0_i32, %c0_i32_0 : i32, i32
  }
  func.func @transform_7(%arg0: i32, %arg1: i32) -> (i32, i32) {
    %c0_i32 = arith.constant 0 : i32
    %c0_i32_0 = arith.constant 0 : i32
    return %arg0, %c0_i32 : i32, i32
  }
}

</mosaic_0001>

<bundles_post_ra>
// kernel: biconv_forward.1
= control target key start
LH: loop header
LB: loop body
LE: loop exit
PB: predicated region body
PF: predicated region fallthrough
CT: control target
= control target key end

     0   :  { %s3234_s0 = inlined_call_operand.hbm [shape: bf16[256,256], index: 0, kind: input, shape index: {}, may-alias: {0,1}]   ;;  %s3235_s1 = inlined_call_operand.hbm [shape: bf16[256,256], index: 1, kind: input, shape index: {}, may-alias: {0,1}]   ;;  %s3236_s2 = inlined_call_operand.hbm [shape: bf16[256,64], index: 2, kind: input, shape index: {}]   ;;  %s3237_s3 = inlined_call_operand.hbm [shape: bf16[256,64], index: 3, kind: input, shape index: {}]   ;;  %s3238_s4 = inlined_call_operand.hbm [shape: f32[256,64], index: 4, kind: input, shape index: {}]   ;;  %s3239_s5 = inlined_call_operand.hbm [shape: f32[64,128], index: 5, kind: input, shape index: {}]   ;;  %s3240_s6 = inlined_call_operand.hbm [shape: f32[1,128], index: 6, kind: input, shape index: {}]   ;;  %s3241_s7 = inlined_call_operand.hbm [shape: f32[256,128], index: 7, kind: output, shape index: {}]  }
   0x1   :  { %3280 = sst [smem:[#allocation38_spill]] %s3235_s1 }
   0x2   :  { %3281 = sst [smem:[#allocation39_spill]] %s3237_s3 }
   0x3   :  { %3282 = sst [smem:[#allocation40_spill]] %s3238_s4 }
   0x4   :  { %3283 = sst [smem:[#allocation41_spill]] %s3239_s5 }
   0x5   :  { %3284 = sst [smem:[#allocation42_spill]] %s3241_s7 }
   0x6   :  { %12 = vsyncpa [#allocation4], 0 }
   0x7   :  { %14 = vsyncpa [#allocation4 + $0x1], 0 }
   0x8   :  { %15 = vsyncpa [#allocation7], 0 }
   0x9   :  { %17 = vsyncpa [#allocation7 + $0x1], 0 }
   0xa   :  { %18 = vsyncpa [#allocation10], 0 }
   0xb   :  { %20 = vsyncpa [#allocation10 + $0x1], 0 }
   0xc   :  { %21 = vsyncpa [#allocation13], 0 }
   0xd   :  { %22 = vsyncpa [#allocation5], 0 }
   0xe   :  { %24 = vsyncpa [#allocation5 + $0x1], 0  ;;  %s2534_s24 = smov 0   ;;  %s2536_s25 = smov 0  }
   0xf   :  { %s2538_s26 = smov 0   ;;  %s2540_s27 = smov 0  }
  0x10   :  { %s2542_s28 = smov 0   ;;  %s2544_s29 = smov 0  }
  0x11   :  { %s2546_s30 = smov 0   ;;  %s2548_s8 = smov 0  }
  0x12   :  { %s2550_s9 = smov 0   ;;  %s2552_s10 = smov 0  }
  0x13   :  { %s2554_s11 = smov 0   ;;  %s2556_s12 = smov 0  }
  0x14   :  { %s2558_s13 = smov 0   ;;  %s2560_s14 = smov 0  }
  0x15 LB: > { %3285 = sst [smem:[#allocation23_spill]] %s2425_s24  ;;  %s2605_s15 = sadd.s32 4294967295, %s2477_s14   ;;  %s2477_s14 = sphi %s2560_s14, %s30_s14   ;;  %s2473_s13 = sphi %s2558_s13, %s3376_s13   ;;  %s2469_s12 = sphi %s2556_s12, %s3375_s12   ;;  %s2465_s11 = sphi %s2554_s11, %s3374_s11   ;;  %s2461_s10 = sphi %s2552_s10, %s3373_s10   ;;  %s2457_s9 = sphi %s2550_s9, %s3372_s9   ;;  %s2453_s8 = sphi %s2548_s8, %s3371_s8   ;;  %s2449_s30 = sphi %s2546_s30, %s3365_s30   ;;  %s2445_s29 = sphi %s2544_s29, %s3364_s29   ;;  %s2441_s28 = sphi %s2542_s28, %s3363_s28   ;;  %s2437_s27 = sphi %s2540_s27, %s3362_s27   ;;  %s2433_s26 = sphi %s2538_s26, %s3370_s26   ;;  %s2429_s25 = sphi %s2536_s25, %s3361_s25   ;;  %s2425_s24 = sphi %s2534_s24, %s3360_s24  }
  0x16   : > { %3286 = sst [smem:[#allocation24_spill]] %s2429_s25  ;;  %p1623_p0 = scmp.ge.s32.totalorder %s2477_s14, 1 }
  0x17   : > { %3287 = sst [smem:[#allocation25_spill]] %s2433_s26  ;;  %p3243_p1 = scmp.eq.s32.totalorder %s2605_s15, 0 }
  0x18   : > { %3288 = sst [smem:[#allocation26_spill]] %s2441_s28  ;;  %p249_p3 = scmp.lt.s32.totalorder %s2477_s14, 5 }
  0x19   : > { %3289 = sst [smem:[#allocation27_spill]] %s2445_s29  ;;  %s2479_s17 = smov [#allocation12]  }
  0x1a   : > { %3290 = sst [smem:[#allocation28_spill]] %s2453_s8  ;;  %p2611_p4 = pnand %p1623_p0, %p249_p3 }
  0x1b   : > { %3291 = sst [smem:[#allocation29_spill]] %s2461_s10  ;;  %s261_s18 = sshll.u32 %s2479_s17, 4  ;;  %s262_s18 = int_to_ptr.vmem [resolvable:$true] %s261_s18 }
  0x1c   : > { %3292 = sst [smem:[#allocation30_spill]] %s2465_s11  ;;  %p1919_p5 = pneg %p2611_p4 }
  0x1d   : > { %s3293_s16 = scalar_select %p2611_p4, 1, 0 }
  0x1e   : > { %p2619_p6 = pnand %p1919_p5, %p3243_p1  ;;  %s3296_s5 = sld [smem:[#allocation41_spill]] }
  0x1f   : > { %3294 = sst [smem:[#allocation31_spill]] %s3293_s16 }
  0x20   : > { %p3258_p8 = pneg %p2619_p6 }
  0x24   : > { %s2105_s22 = scalar_lea.hbm %s3296_s5, 1024 }
  0x25   : > { %p2106_p7 = scmp.ne.s32.totalorder %s3296_s5, %s2105_s22  ;;  %p2112_p11 = scmp.lt.u32.totalorder %s2105_s22, %s3296_s5 }
  0x27   : > { %p2108_p9 = pnand %p3258_p8, %p2106_p7 }
  0x29   : > { %p2109_p10 = pneg %p2108_p9 }
  0x2b   : > { %p2114_p12 = pnand %p2112_p11, %p2109_p10 }
  0x2d   : > { %2117 = shalt.err (!%p2114_p12)
}
  0x2e   : > { %s2118_s20 = scalar_lea.vmem %s262_s18, 1024  ;;  %p2126_p5 = scmp.lt.s32.totalorder %s262_s18, %s262_s18 }
  0x2f   : > { %p2119_p13 = scmp.ne.s32.totalorder %s262_s18, %s2118_s20  ;;  %p2127_p2 = scmp.lt.s32.totalorder %s2118_s20, %s2118_s20 }
  0x31   : > { %p2121_p0 = pnand %p2119_p13, %p3258_p8  ;;  %p2128_p1 = por %p2127_p2, %p2126_p5 }
  0x33   : > { %p2122_p3 = pneg %p2121_p0 }
  0x35   : > { %p2129_p4 = pnand %p2128_p1, %p2122_p3 }
  0x37   : > { %2132 = shalt.err (!%p2129_p4)
}
  0x38   : > { %s3246_s7 = smov 128   ;;  %s3245_s11 = smov 8  }
  0x39   : > { %1922 = dma.hbm_to_vmem [thread:$0]  (!%p2619_p6), %s3296_s5, 1024, %s262_s18, [#allocation13], %s3246_s7, %s3246_s7, %s3245_s11  }
  0x3a   : > { %s39_s23 = sadd.s32 1, %s2469_s12  ;;  %s42_s17 = sadd.s32 1, %s2473_s13 }
  0x3b   : > { %p40_p1 = scmp.ge.s32.totalorder %s39_s23, 2  ;;  %s51_s20 = sadd.s32 1, %s2457_s9 }
  0x3c   : > { %p58_p2 = scmp.ne.s32.totalorder %s2457_s9, %s2453_s8  ;;  %p3260_p4 = scmp.eq.s32.totalorder %s2477_s14, 0 }
  0x3d   : > { %s3378_s23 = smov (%p40_p1, %s39_s23), 0  ;;  %s3380_s17 = smov (!%p40_p1, %s42_s17), %s2473_s13 }
  0x3e   : > { %3297 = sst [smem:[#allocation32_spill]] %s3378_s23  ;;  %s2659_s10 = ssub.s32 %s2469_s12, %s3378_s23 }
  0x3f   : > { %p60_p7 = por %p3260_p4, %p58_p2  ;;  %p44_p9 = scmp.ge.s32.totalorder %s3380_s17, 2 }
  0x40   : > { %p64_p10 = scmp.ne.s32.totalorder %s2453_s8, %s2449_s30  ;;  %p3259_p11 = scmp.lt.s32.totalorder %s2477_s14, 4 }
  0x41   : > { %s3252_s18 = sand.u32 1, %s2457_s9   ;;  %s3382_s17 = smov (%p44_p9, %s3380_s17), 0 }
  0x42   : > { %3298 = sst [smem:[#allocation33_spill]] %s3382_s17  ;;  %p3299_p12 = scmp.eq.s32.totalorder %s2605_s15, 0 }
  0x43   : > { %s2677_s22 = sshll.u32 %s3252_s18, 6  ;;  %s2681_s11 = ssub.s32 %s2473_s13, %s3382_s17 }
  0x44   : > { %p2671_p13 = por %p3299_p12, %p64_p10  ;;  %p2685_p0 = pnand %p3259_p11, %p60_p7 }
  0x45   : > { %s48_s7 = sor.u32 %s2659_s10, %s2681_s11  ;;  %s3262_s5 = sand.u32 1, %s2477_s14  }
  0x46   : > { %s3300_s21 = scalar_select %p2671_p13, 1, 0 }
  0x47   : > { %s3302_s30 = scalar_select %p2685_p0, 1, 0 }
  0x48   : > { %3301 = sst [smem:[#allocation34_spill]] %s3300_s21  ;;  %p49_p3 = scmp.eq.s32.totalorder %s48_s7, 0 }
  0x49   : > { %s1710_s21 = sshll.u32 %s2469_s12, 5  ;;  %s313_s8 = scalar_lea.vmem [#allocation6], %s2677_s22 }
  0x4a   : > { %s2693_s23 = scalar_select %p49_p3, %s2457_s9, %s51_s20  }
  0x4b   : > { %s322_s18 = sshll.u32 %s313_s8, 4  ;;  %s319_s16 = sadd.s32 %s2473_s13, %s1710_s21  ;;  %s2698_s18 = int_to_ptr.vmem [resolvable:$true] %s322_s18 }
  0x4c   : > { %3303 = sst [smem:[#allocation35_spill]] %s2693_s23  ;;  %s1634_s17 = sshll.u32 %s319_s16, 6 }
  0x4d   : > { %s3304_s1 = sld [smem:[#allocation38_spill]]  ;;  %s2707_s7 = scalar_lea.sflag [#allocation7], %s3262_s5 }
  0x4e   : > { %p3271_p1 = pneg %p2685_p0 }
  0x53   : > { %s2703_s25 = scalar_lea.hbm %s3304_s1, %s1634_s17  ;;  %s2138_s4 = scalar_lea.hbm %s3304_s1, 4096 }
  0x54   : > { %s2133_s20 = scalar_lea.hbm %s2703_s25, 1024  ;;  %p2139_p9 = scmp.lt.u32.totalorder %s2703_s25, %s3304_s1 }
  0x55   : > { %p2134_p5 = scmp.ne.s32.totalorder %s2703_s25, %s2133_s20  ;;  %p2140_p10 = scmp.lt.u32.totalorder %s2138_s4, %s2133_s20 }
  0x56   : > { %p2142_p3 = scmp.lt.u32.totalorder %s2133_s20, %s2703_s25 }
  0x57   : > { %p2136_p2 = pnand %p3271_p1, %p2134_p5  ;;  %p2141_p12 = por %p2140_p10, %p2139_p9 }
  0x59   : > { %p2137_p7 = pneg %p2136_p2  ;;  %p2143_p8 = por %p2142_p3, %p2141_p12 }
  0x5b   : > { %p2144_p11 = pnand %p2143_p8, %p2137_p7 }
  0x5d   : > { %2147 = shalt.err (!%p2144_p11)
}
  0x5e   : > { %s2148_s21 = scalar_lea.vmem %s2698_s18, 1024  ;;  %s2482_s8 = smov [#allocation6]  }
  0x5f   : > { %p2149_p5 = scmp.ne.s32.totalorder %s2698_s18, %s2148_s21  ;;  %s2153_s16 = sshll.u32 %s2482_s8, 4  ;;  %s2154_s16 = int_to_ptr.vmem [resolvable:$false] %s2153_s16 }
  0x60   : > { %s2155_s24 = scalar_lea.vmem %s2154_s16, 2048  ;;  %p2156_p13 = scmp.lt.s32.totalorder %s2698_s18, %s2154_s16 }
  0x61   : > { %p2151_p2 = pnand %p2149_p5, %p3271_p1  ;;  %p2157_p9 = scmp.lt.s32.totalorder %s2155_s24, %s2148_s21 }
  0x63   : > { %p2152_p4 = pneg %p2151_p2  ;;  %p2158_p10 = por %p2157_p9, %p2156_p13 }
  0x65   : > { %p2159_p12 = pnand %p2158_p10, %p2152_p4 }
  0x67   : > { %2162 = shalt.err (!%p2159_p12)
}
  0x68   : > { %s3264_s20 = smov 64   ;;  %s3266_s4 = smov 4  }
  0x69   : > { %s3305_s17 = smov 128   ;;  %p103_p8 = scmp.eq.s32.totalorder %s2659_s10, 0 }
  0x6a   : > { %1932 = dma.hbm_to_vmem [thread:$0]  (!%p2685_p0), %s2703_s25, 1024, %s2698_s18, %s2707_s7, %s3305_s17, %s3264_s20, %s3266_s4  }
  0x6b   : > { %s105_s21 = sadd.s32 1, %s2445_s29  ;;  %p112_p4 = scmp.ne.s32.totalorder %s2445_s29, %s2441_s28 }
  0x6c   : > { %p118_p11 = scmp.ne.s32.totalorder %s2441_s28, %s2437_s27  ;;  %p3307_p13 = scmp.eq.s32.totalorder %s2477_s14, 0 }
  0x6d   : > { %s2745_s8 = scalar_select %p103_p8, %s2445_s29, %s105_s21  }
  0x6e   : > { %p114_p7 = por %p112_p4, %p3307_p13  ;;  %p3308_p3 = scmp.eq.s32.totalorder %s2605_s15, 0 }
  0x6f   : > { %3306 = sst [smem:[#allocation36_spill]] %s2745_s8  ;;  %s334_s24 = sand.u32 1, %s2445_s29  }
  0x70   : > { %p2751_p5 = por %p118_p11, %p3308_p3  ;;  %s1711_s5 = sshll.u32 %s2469_s12, 10 }
  0x71   : > { %s1635_s1 = sshll.u32 %s334_s24, 6  ;;  %s2760_s25 = scalar_lea.hbm %s3236_s2, %s1711_s5 }
  0x72   : > { %s3309_s16 = scalar_select %p2751_p5, 1, 0 }
  0x73   : > { %p3311_p2 = scmp.lt.s32.totalorder %s2477_s14, 4  ;;  %s336_s10 = scalar_lea.vmem [#allocation8], %s1635_s1 }
  0x74   : > { %3310 = sst [smem:[#allocation37_spill]] %s3309_s16  ;;  %s343_s18 = sshll.u32 %s336_s10, 4  ;;  %s2768_s18 = int_to_ptr.vmem [resolvable:$true] %s343_s18 }
  0x75   : > { %p2764_p9 = pnand %p3311_p2, %p114_p7  ;;  %s3313_s3 = sld [smem:[#allocation39_spill]] }
  0x76   : > { %s357_s26 = scalar_lea.vmem [#allocation9], %s1635_s1  ;;  %s2485_s4 = smov [#allocation14]  }
  0x77   : > { %s3312_s27 = scalar_select %p2764_p9, 1, 0 }
  0x78   : > { %s364_s23 = sshll.u32 %s357_s26, 4  ;;  %s2777_s8 = sshll.u32 %s2485_s4, 4  ;;  %s2775_s23 = int_to_ptr.vmem [resolvable:$true] %s364_s23  ;;  %s276_s8 = int_to_ptr.vmem [resolvable:$true] %s2777_s8 }
  0x79   : > { %s3314_s29 = sand.u32 1, %s2477_s14   ;;  %p3275_p12 = pneg %p2764_p9 }
  0x7a   : > { %s2781_s10 = scalar_lea.sflag [#allocation10], %s3314_s29 }
  0x7b   : > { %s2773_s24 = scalar_lea.hbm %s3313_s3, %s1711_s5  ;;  %s2168_s1 = scalar_lea.hbm %s3313_s3, 2048 }
  0x7c   : > { %s2163_s16 = scalar_lea.hbm %s2773_s24, 1024  ;;  %p2169_p11 = scmp.lt.u32.totalorder %s2773_s24, %s3313_s3 }
  0x7d   : > { %p2164_p10 = scmp.ne.s32.totalorder %s2773_s24, %s2163_s16  ;;  %p2170_p13 = scmp.lt.u32.totalorder %s2168_s1, %s2163_s16 }
  0x7e   : > { %p2172_p3 = scmp.lt.u32.totalorder %s2163_s16, %s2773_s24 }
  0x7f   : > { %p2166_p8 = pnand %p3275_p12, %p2164_p10  ;;  %p2171_p7 = por %p2170_p13, %p2169_p11 }
  0x81   : > { %p2167_p4 = pneg %p2166_p8  ;;  %p2173_p2 = por %p2172_p3, %p2171_p7 }
  0x83   : > { %p2174_p1 = pnand %p2173_p2, %p2167_p4 }
  0x85   : > { %2177 = shalt.err (!%p2174_p1)
}
  0x86   : > { %s2178_s29 = scalar_lea.vmem %s2775_s23, 1024  ;;  %s2486_s4 = smov [#allocation9]  }
  0x87   : > { %p2179_p10 = scmp.ne.s32.totalorder %s2775_s23, %s2178_s29  ;;  %s2183_s5 = sshll.u32 %s2486_s4, 4  ;;  %s2184_s5 = int_to_ptr.vmem [resolvable:$false] %s2183_s5 }
  0x88   : > { %s2185_s20 = scalar_lea.vmem %s2184_s5, 2048  ;;  %p2186_p0 = scmp.lt.s32.totalorder %s2775_s23, %s2184_s5 }
  0x89   : > { %p2181_p8 = pnand %p2179_p10, %p3275_p12  ;;  %p2187_p11 = scmp.lt.s32.totalorder %s2185_s20, %s2178_s29 }
  0x8b   : > { %p2182_p5 = pneg %p2181_p8  ;;  %p2188_p13 = por %p2187_p11, %p2186_p0 }
  0x8d   : > { %p2189_p7 = pnand %p2188_p13, %p2182_p5 }
  0x8f   : > { %2192 = shalt.err (!%p2189_p7)
}
  0x90   : > { %s3315_s16 = smov 4   ;;  %s3316_s1 = smov 64  }
  0x91   : > { %1938 = dma.hbm_to_vmem [thread:$0]  (!%p2764_p9), %s2773_s24, 1024, %s2775_s23, %s2781_s10, %s3316_s1, %s3316_s1, %s3315_s16  }
  0x92   : > { %s2193_s4 = scalar_lea.hbm %s3240_s6, 16  ;;  %p3317_p1 = pneg %p2619_p6 }
  0x93   : > { %p2194_p0 = scmp.ne.s32.totalorder %s3240_s6, %s2193_s4  ;;  %p2200_p3 = scmp.lt.u32.totalorder %s2193_s4, %s3240_s6 }
  0x95   : > { %p2196_p5 = pnand %p2194_p0, %p3317_p1 }
  0x97   : > { %p2197_p4 = pneg %p2196_p5 }
  0x99   : > { %p2202_p2 = pnand %p2200_p3, %p2197_p4 }
  0x9b   : > { %2205 = shalt.err (!%p2202_p2)
}
  0x9c   : > { %s2206_s24 = scalar_lea.vmem %s276_s8, 16  ;;  %p3318_p8 = pmov %p3317_p1 }
  0x9d   : > { %p2207_p10 = scmp.ne.s32.totalorder %s276_s8, %s2206_s24  ;;  %s2213_s23 = scalar_lea.vmem %s276_s8, 32 }
  0x9e   : > { %p2214_p7 = scmp.lt.s32.totalorder %s276_s8, %s276_s8  ;;  %p2215_p12 = scmp.lt.s32.totalorder %s2213_s23, %s2206_s24 }
  0x9f   : > { %p2209_p11 = pnand %p2207_p10, %p3318_p8 }
  0xa0   : > { %p2216_p9 = por %p2215_p12, %p2214_p7 }
  0xa1   : > { %p2210_p13 = pneg %p2209_p11 }
  0xa3   : > { %p2217_p0 = pnand %p2216_p9, %p2210_p13 }
  0xa5   : > { %2220 = shalt.err (!%p2217_p0)
}
  0xa6   : > { %1925 = dma.hbm_to_vmem [thread:$0]  (!%p2619_p6), %s3240_s6, 16, %s276_s8, [#allocation13]  }
  0xa7   : > { %s1709_s26 = sshll.u32 %s2473_s13, 5  ;;  %s290_s29 = scalar_lea.vmem [#allocation3], %s2677_s22 }
  0xa8   : > { %s296_s4 = sadd.s32 %s2469_s12, %s1709_s26  ;;  %s299_s5 = sshll.u32 %s290_s29, 4  ;;  %s2836_s5 = int_to_ptr.vmem [resolvable:$true] %s299_s5 }
  0xa9   : > { %s1630_s20 = sshll.u32 %s296_s4, 6  ;;  %s3319_s28 = sand.u32 1, %s2457_s9  }
  0xaa   : > { %s2841_s19 = scalar_lea.hbm %s3234_s0, %s1630_s20  ;;  %s2845_s21 = scalar_lea.sflag [#allocation4], %s3319_s28 }
  0xab   : > { %s2221_s8 = scalar_lea.hbm %s2841_s19, 1024  ;;  %p3320_p9 = scmp.ne.s32.totalorder %s3302_s30, 0 }
  0xac   : > { %p2222_p6 = scmp.ne.s32.totalorder %s2841_s19, %s2221_s8  ;;  %s2226_s26 = scalar_lea.hbm %s3234_s0, 4096 }
  0xad   : > { %p3321_p12 = pneg %p3320_p9  ;;  %p2227_p4 = scmp.lt.u32.totalorder %s2841_s19, %s3234_s0 }
  0xae   : > { %p2228_p3 = scmp.lt.u32.totalorder %s2226_s26, %s2221_s8  ;;  %p2230_p10 = scmp.lt.u32.totalorder %s2221_s8, %s2841_s19 }
  0xaf   : > { %p2224_p1 = pnand %p2222_p6, %p3321_p12 }
  0xb0   : > { %p2229_p2 = por %p2228_p3, %p2227_p4 }
  0xb1   : > { %p2225_p5 = pneg %p2224_p1 }
  0xb2   : > { %p2231_p8 = por %p2230_p10, %p2229_p2 }
  0xb4   : > { %p2232_p11 = pnand %p2231_p8, %p2225_p5 }
  0xb6   : > { %2235 = shalt.err (!%p2232_p11)
}
  0xb7   : > { %s2236_s28 = scalar_lea.vmem %s2836_s5, 1024  ;;  %p3322_p7 = pmov %p3321_p12 }
  0xb8   : > { %p2237_p13 = scmp.ne.s32.totalorder %s2836_s5, %s2236_s28  ;;  %s2487_s20 = smov [#allocation3]  }
  0xb9   : > { %s2241_s24 = sshll.u32 %s2487_s20, 4  ;;  %s2242_s24 = int_to_ptr.vmem [resolvable:$false] %s2241_s24 }
  0xba   : > { %p2239_p0 = pnand %p2237_p13, %p3322_p7  ;;  %s2243_s23 = scalar_lea.vmem %s2242_s24, 2048 }
  0xbb   : > { %p2244_p12 = scmp.lt.s32.totalorder %s2836_s5, %s2242_s24  ;;  %p2245_p1 = scmp.lt.s32.totalorder %s2243_s23, %s2236_s28 }
  0xbc   : > { %p2240_p6 = pneg %p2239_p0 }
  0xbd   : > { %p2246_p4 = por %p2245_p1, %p2244_p12 }
  0xbf   : > { %p2247_p3 = pnand %p2246_p4, %p2240_p6 }
  0xc1   : > { %2250 = shalt.err (!%p2247_p3)
}
  0xc2   : > { %1929 = dma.hbm_to_vmem [thread:$0]  (!%p3320_p9), %s2841_s19, 1024, %s2836_s5, %s2845_s21, %s3305_s17, %s3316_s1, %s3315_s16  }
  0xc3   : > { %s2251_s8 = scalar_lea.hbm %s2760_s25, 1024  ;;  %p3323_p2 = scmp.ne.s32.totalorder %s3312_s27, 0 }
  0xc4   : > { %p2252_p5 = scmp.ne.s32.totalorder %s2760_s25, %s2251_s8  ;;  %s2256_s3 = scalar_lea.hbm %s3236_s2, 2048 }
  0xc5   : > { %p3324_p10 = pneg %p3323_p2  ;;  %p2257_p13 = scmp.lt.u32.totalorder %s2760_s25, %s3236_s2 }
  0xc6   : > { %p2258_p7 = scmp.lt.u32.totalorder %s2256_s3, %s2251_s8  ;;  %p2260_p6 = scmp.lt.u32.totalorder %s2251_s8, %s2760_s25 }
  0xc7   : > { %p2254_p8 = pnand %p2252_p5, %p3324_p10 }
  0xc8   : > { %p2259_p0 = por %p2258_p7, %p2257_p13 }
  0xc9   : > { %p2255_p11 = pneg %p2254_p8 }
  0xca   : > { %p2261_p12 = por %p2260_p6, %p2259_p0 }
  0xcc   : > { %p2262_p1 = pnand %p2261_p12, %p2255_p11 }
  0xce   : > { %2265 = shalt.err (!%p2262_p1)
}
  0xcf   : > { %s2266_s5 = scalar_lea.vmem %s2768_s18, 1024  ;;  %p3325_p4 = pmov %p3324_p10 }
  0xd0   : > { %p2267_p9 = scmp.ne.s32.totalorder %s2768_s18, %s2266_s5  ;;  %s2488_s19 = smov [#allocation8]  }
  0xd1   : > { %s2271_s21 = sshll.u32 %s2488_s19, 4  ;;  %s2272_s21 = int_to_ptr.vmem [resolvable:$false] %s2271_s21 }
  0xd2   : > { %p2269_p3 = pnand %p2267_p9, %p3325_p4  ;;  %s2273_s29 = scalar_lea.vmem %s2272_s21, 2048 }
  0xd3   : > { %p2274_p10 = scmp.lt.s32.totalorder %s2768_s18, %s2272_s21  ;;  %p2275_p8 = scmp.lt.s32.totalorder %s2273_s29, %s2266_s5 }
  0xd4   : > { %p2270_p5 = pneg %p2269_p3 }
  0xd5   : > { %p2276_p13 = por %p2275_p8, %p2274_p10 }
  0xd7   : > { %p2277_p7 = pnand %p2276_p13, %p2270_p5 }
  0xd9   : > { %2280 = shalt.err (!%p2277_p7)
}
  0xda   : > { %s3326_s28 = sld [smem:[#allocation25_spill]]  ;;  %s3327_s20 = sld [smem:[#allocation24_spill]] }
  0xdb   : > { %s3328_s24 = sld [smem:[#allocation23_spill]]  ;;  %s1622_s27 = sadd.s32 4294967294, %s2477_s14  }
  0xdc   : > { %1935 = dma.hbm_to_vmem [thread:$0]  (!%p3323_p2), %s2760_s25, 1024, %s2768_s18, %s2707_s7, %s3316_s1, %s3316_s1, %s3315_s16  }
  0xdd   : > { %p155_p11 = scmp.eq.s32.totalorder %s2681_s11, 0  ;;  %p3329_p12 = scmp.eq.s32.totalorder %s2477_s14, 0 }
  0xde   : > { %p3330_p9 = scmp.eq.s32.totalorder %s2605_s15, 0  ;;  %p3332_p3 = scmp.eq.s32.totalorder %s2605_s15, 3 }
  0xdf   : > { %p242_p2 = scmp.eq.s32.totalorder %s1622_s27, 3  ;;  %s1713_s7 = sshll.u32 %s2473_s13, 11 }
  0xe0   : > { %s157_s23 = sadd.s32 1, %s3326_s28  ;;  %p164_p0 = scmp.ne.s32.totalorder %s3326_s28, %s3327_s20 }
  0xe1   : > { %p170_p6 = scmp.ne.s32.totalorder %s3327_s20, %s3328_s24  ;;  %s376_s11 = sand.u32 1, %s3326_s28  }
  0xe2   : > { %s2909_s8 = scalar_select %p155_p11, %s3326_s28, %s157_s23  }
  0xe3   : > { %p166_p1 = por %p164_p0, %p3329_p12  ;;  %p2915_p4 = por %p170_p6, %p3330_p9 }
  0xe4   : > { %p2921_p5 = por %p3332_p3, %p164_p0  ;;  %p2927_p10 = por %p242_p2, %p170_p6 }
  0xe5   : > { %s1641_s18 = sshll.u32 %s376_s11, 7  ;;  %s3335_s3 = sld [smem:[#allocation40_spill]] }
  0xe6   : > { %s3333_s30 = scalar_select %p2921_p5, 1, 0 }
  0xe7   : > { %s3334_s25 = scalar_select %p2927_p10, 1, 0 }
  0xe8   : > { %s378_s4 = scalar_lea.vmem [#allocation11], %s1641_s18  ;;  %p3336_p8 = scmp.lt.s32.totalorder %s2477_s14, 4 }
  0xe9   : > { %s385_s5 = sshll.u32 %s378_s4, 4  ;;  %s2942_s5 = int_to_ptr.vmem [resolvable:$true] %s385_s5 }
  0xea   : > { %p2938_p13 = pnand %p3336_p8, %p166_p1 }
  0xeb   : > { %s2934_s26 = scalar_lea.hbm %s3335_s3, %s1713_s7  ;;  %s2286_s20 = scalar_lea.hbm %s3335_s3, 4096 }
  0xec   : > { %s2281_s21 = scalar_lea.hbm %s2934_s26, 2048  ;;  %p2283_p11 = pneg %p2938_p13 }
  0xed   : > { %p2282_p7 = scmp.ne.s32.totalorder %s2934_s26, %s2281_s21  ;;  %p2287_p12 = scmp.lt.u32.totalorder %s2934_s26, %s3335_s3 }
  0xee   : > { %p2288_p1 = scmp.lt.u32.totalorder %s2286_s20, %s2281_s21  ;;  %p2290_p3 = scmp.lt.u32.totalorder %s2281_s21, %s2934_s26 }
  0xef   : > { %p2284_p0 = pnand %p2283_p11, %p2282_p7 }
  0xf0   : > { %p2289_p9 = por %p2288_p1, %p2287_p12 }
  0xf1   : > { %p2285_p6 = pneg %p2284_p0 }
  0xf2   : > { %p2291_p2 = por %p2290_p3, %p2289_p9 }
  0xf4   : > { %p2292_p8 = pnand %p2291_p2, %p2285_p6 }
  0xf6   : > { %2295 = shalt.err (!%p2292_p8)
}
  0xf7   : > { %s2296_s23 = scalar_lea.vmem %s2942_s5, 2048  ;;  %s2489_s11 = smov [#allocation11]  }
  0xf8   : > { %p2297_p7 = scmp.ne.s32.totalorder %s2942_s5, %s2296_s23  ;;  %s2301_s7 = sshll.u32 %s2489_s11, 4  ;;  %s2302_s7 = int_to_ptr.vmem [resolvable:$false] %s2301_s7 }
  0xf9   : > { %s2303_s18 = scalar_lea.vmem %s2302_s7, 4096  ;;  %p2304_p5 = scmp.lt.s32.totalorder %s2942_s5, %s2302_s7 }
  0xfa   : > { %p2299_p0 = pnand %p2297_p7, %p2283_p11  ;;  %p2305_p12 = scmp.lt.s32.totalorder %s2303_s18, %s2296_s23 }
  0xfc   : > { %p2300_p10 = pneg %p2299_p0  ;;  %p2306_p1 = por %p2305_p12, %p2304_p5 }
  0xfe   : > { %p2307_p9 = pnand %p2306_p1, %p2300_p10 }
 0x100   : > { %2310 = shalt.err (!%p2307_p9)
}
 0x101   : > { %s3338_s16 = smov 8   ;;  %s3339_s1 = sld [smem:[#allocation31_spill]] }
 0x102   : > { %1941 = dma.hbm_to_vmem [thread:$0]  (!%p2938_p13), %s2934_s26, 2048, %s2942_s5, %s2781_s10, %s3305_s17, %s3305_s17, %s3338_s16  }
 0x107   : > { %p3340_p11 = scmp.ne.s32.totalorder %s3339_s1, 0 }
 0x108   : > { %s3341_s4 = sld [smem:[#allocation28_spill]] (!%p3340_p11)  ;;  %s3342_s21 = sld [smem:[#allocation34_spill]] (!%p3340_p11) }
 0x109   : > { %397 = sbr.rel (%p3340_p11) target bundleno = 1078 (0x436), region = 48 }
 0x10e   : > { %s399_s29 = sand.u32 (!%p3340_p11), 1, %s3341_s4   ;;  %p3343_p5 = scmp.ne.s32.totalorder (!%p3340_p11), %s3342_s21, 0 }
 0x10f   : > { %s1645_s28 = sshll.u32 (!%p3340_p11), %s399_s29, 6  ;;  %s400_s20 = scalar_lea.sflag (!%p3340_p11), [#allocation4], %s399_s29 }
 0x110   : > { %s2976_s24 = scalar_lea.vmem [#allocation3], %s1645_s28 }
 0x111   : > { %2396 = dma.done.wait (%p3343_p5), %s400_s20, 1024  }
 0x112   : > { %2398 = vsyncadd (%p3343_p5), %s400_s20, 4294966272  ;;  %s408_s19 = sand.u32 1, %s2605_s15   ;;  %s2983_s17 = scalar_lea.vmem [#allocation6], %s1645_s28 }
 0x113   : > { %s409_s27 = scalar_lea.sflag [#allocation7], %s408_s19 }
 0x114   : > { %2400 = dma.done.wait (%p3343_p5), %s409_s27, 1024  }
 0x115   : > { %2402 = vsyncadd (%p3343_p5), %s409_s27, 4294966272  ;;  %s3344_s10 = sld [smem:[#allocation26_spill]]  ;;  %s3345_s26 = sld [smem:[#allocation37_spill]] }
 0x11b   : > { %s419_s5 = sand.u32 1, %s3344_s10   ;;  %p3346_p10 = scmp.ne.s32.totalorder %s3345_s26, 0 }
 0x11c   : > { %s1647_s23 = sshll.u32 %s419_s5, 6 }
 0x11d   : > { %s2990_s11 = scalar_lea.vmem [#allocation8], %s1647_s23 }
 0x11e   : > { %2404 = dma.done.wait (%p3346_p10), %s409_s27, 1024  }
 0x11f   : > { %2406 = vsyncadd (%p3346_p10), %s409_s27, 4294966272  ;;  %s427_s7 = scalar_lea.sflag [#allocation10], %s408_s19  ;;  %s2996_s18 = scalar_lea.vmem [#allocation9], %s1647_s23 }
 0x120   : > { %2408 = dma.done.wait (%p3346_p10), %s427_s7, 1024  }
 0x121   : > { %2410 = vsyncadd (%p3346_p10), %s427_s7, 4294966272  ;;  %s3347_s16 = sld [smem:[#allocation24_spill]] }
 0x127   : > { %s437_s1 = sand.u32 1, %s3347_s16  }
 0x128   : > { %s1649_s4 = sshll.u32 %s437_s1, 7 }
 0x129   : > { %s3005_s21 = scalar_lea.vmem [#allocation11], %s1649_s4 }
 0x12a   : > { %2412 = dma.done.wait (%p2915_p4), %s427_s7, 2048  }
 0x12b   : > { %2414 = vsyncadd (%p2915_p4), %s427_s7, 4294965248  ;;  %p3348_p13 = scmp.eq.s32.totalorder %s2605_s15, 0 }
 0x12d   : > { %2416 = dma.done.wait (%p3348_p13), [#allocation13], 1040   ;;  %p3349_p6 = pmov %p3348_p13 }
 0x12e   : > { %s3015_s29 = scalar_lea.vmem [#allocation15], %s1649_s4  ;;  %s3350_s28 = sld [smem:[#allocation29_spill]] }
 0x12f   : > { %2418 = vsyncadd (%p3349_p6), [#allocation13], 4294966256 }
 0x134   : > { %p1653_p3 = scmp.ne.s32.totalorder %s3350_s28, 0 }
 0x135   : > { %v525_v0 = vld [vmem:[#allocation12] sm:$0xff] (!%p1653_p3)  ;;  %v526_v1 = vld [vmem:[#allocation12 + $0x8] sm:$0xff] (!%p1653_p3)  ;;  %v527_v2 = vld [vmem:[#allocation12 + $0x10] sm:$0xff] (!%p1653_p3)  ;;  %vm540_vm0 = vcmask (!%p1653_p3), 523264  }
 0x136   : > { %508 = sbr.rel (%p1653_p3) target bundleno = 556 (0x22c), region = 80  ;;  %v1875_v3 = vpack.c.bf16 (!%p1653_p3), %v526_v1, %v525_v0  ;;  %v528_v4 = vld [vmem:[#allocation12 + $0x18] sm:$0xff] (!%p1653_p3)  ;;  %v529_v6 = vld [vmem:[#allocation12 + $0x20] sm:$0xff] (!%p1653_p3)  ;;  %v530_v7 = vld [vmem:[#allocation12 + $0x28] sm:$0xff] (!%p1653_p3) }
 0x137   : > { %v1879_v5 = vpack.c.bf16 (!%p1653_p3), %v528_v4, %v527_v2  ;;  %v509_v8 = vld [vmem:[%s3005_s21] sm:$0xff] (!%p1653_p3)  ;;  %v1883_v10 = vpack.c.bf16 (!%p1653_p3), %v530_v7, %v529_v6  ;;  %v531_v11 = vld [vmem:[#allocation12 + $0x30] sm:$0xff] (!%p1653_p3)  ;;  %v532_v12 = vld [vmem:[#allocation12 + $0x38] sm:$0xff] (!%p1653_p3) }
 0x138   : > { %1876 = vmatprep.subr.bf16.mxu0 (!%p1653_p3), %v1875_v3  ;;  %1891 = vmatprep.subr.bf16.mxu1 (!%p1653_p3), %v1875_v3  ;;  %v517_v9 = vld [vmem:[%s3005_s21 + $0x40] sm:$0xff] (!%p1653_p3)  ;;  %v1887_v13 = vpack.c.bf16 (!%p1653_p3), %v532_v12, %v531_v11  ;;  %v510_v14 = vld [vmem:[%s3005_s21 + $0x8] sm:$0xff] (!%p1653_p3)  ;;  %v511_v16 = vld [vmem:[%s3005_s21 + $0x10] sm:$0xff] (!%p1653_p3) }
 0x139   : > { %1878 = vmatpush3.bf16.msra.mxu0 (!%p1653_p3), %v1875_v3  ;;  %1895 = vmatpush3.bf16.msra.mxu1 (!%p1653_p3), %v1875_v3  ;;  %v518_v15 = vld [vmem:[%s3005_s21 + $0x48] sm:$0xff] (!%p1653_p3)  ;;  %v519_v17 = vld [vmem:[%s3005_s21 + $0x50] sm:$0xff] (!%p1653_p3)  ;;  %v512_v18 = vld [vmem:[%s3005_s21 + $0x18] sm:$0xff] (!%p1653_p3) }
 0x13a   : > { %1880 = vmatprep.subr.bf16.mxu0 (!%p1653_p3), %v1879_v5  ;;  %1892 = vmatprep.subr.bf16.mxu1 (!%p1653_p3), %v1879_v5  ;;  %v520_v19 = vld [vmem:[%s3005_s21 + $0x58] sm:$0xff] (!%p1653_p3)  ;;  %v513_v20 = vld [vmem:[%s3005_s21 + $0x20] sm:$0xff] (!%p1653_p3)  ;;  %v514_v22 = vld [vmem:[%s3005_s21 + $0x28] sm:$0xff] (!%p1653_p3) }
 0x13b   : > { %1787 = vmatprep.mubr.msk.f32.mxu0 (!%p1653_p3), %vm540_vm0, %v509_v8  ;;  %1799 = vmatprep.mubr.msk.f32.mxu1 (!%p1653_p3), %vm540_vm0, %v517_v9  ;;  %v521_v21 = vld [vmem:[%s3005_s21 + $0x60] sm:$0xff] (!%p1653_p3)  ;;  %v522_v23 = vld [vmem:[%s3005_s21 + $0x68] sm:$0xff] (!%p1653_p3)  ;;  %v515_v24 = vld [vmem:[%s3005_s21 + $0x30] sm:$0xff] (!%p1653_p3) }
 0x13c   : > { %v523_v25 = vld [vmem:[%s3005_s21 + $0x70] sm:$0xff] (!%p1653_p3)  ;;  %v516_v26 = vld [vmem:[%s3005_s21 + $0x38] sm:$0xff] (!%p1653_p3)  ;;  %v1654_v28 = vld [vmem:[#allocation14] ss:$0 sm:$0xff] (!%p1653_p3) }
 0x13d   : > { %1882 = vmatpush3.bf16.msra.mxu0 %v1879_v5  ;;  %1896 = vmatpush3.bf16.msra.mxu1 %v1879_v5  ;;  %v524_v27 = vld [vmem:[%s3005_s21 + $0x78] sm:$0xff] }
 0x13e   : > { %1884 = vmatprep.subr.bf16.mxu0 %v1883_v10  ;;  %1893 = vmatprep.subr.bf16.mxu1 %v1883_v10 }
 0x141   : > { %1886 = vmatpush3.bf16.msra.mxu0 %v1883_v10  ;;  %1897 = vmatpush3.bf16.msra.mxu1 %v1883_v10 }
 0x142   : > { %1888 = vmatprep.subr.bf16.mxu0 %v1887_v13  ;;  %1894 = vmatprep.subr.bf16.mxu1 %v1887_v13 }
 0x145   : > { %1890 = vmatpush3.bf16.msra.mxu0 %v1887_v13  ;;  %1898 = vmatpush3.bf16.msra.mxu1 %v1887_v13 }
 0x148   : > { %1788 = vmatmul.mubr.msk.f32.vlgmr.msra.gmra.mrb[0].mxu0 %vm540_vm0, %v510_v14  ;;  %1800 = vmatmul.mubr.msk.f32.vlgmr.msra.gmra.mrb[0].mxu1 %vm540_vm0, %v518_v15 }
 0x149   : > { %1790 = vmatprep.mubr.msk.f32.mxu0 %vm540_vm0, %v511_v16  ;;  %1802 = vmatprep.mubr.msk.f32.mxu1 %vm540_vm0, %v519_v17 }
 0x14c   : > { %1791 = vmatmul.mubr.msk.f32.gmra.mrb[2].mxu0 %vm540_vm0, %v512_v18  ;;  %1803 = vmatmul.mubr.msk.f32.gmra.mrb[2].mxu1 %vm540_vm0, %v520_v19 }
 0x14d   : > { %1793 = vmatprep.mubr.msk.f32.mxu0 %vm540_vm0, %v513_v20  ;;  %1805 = vmatprep.mubr.msk.f32.mxu1 %vm540_vm0, %v521_v21 }
 0x150   : > { %1794 = vmatmul.mubr.msk.f32.gmra.mrb[4].mxu0 %vm540_vm0, %v514_v22  ;;  %1806 = vmatmul.mubr.msk.f32.gmra.mrb[4].mxu1 %vm540_vm0, %v522_v23 }
 0x151   : > { %1796 = vmatprep.mubr.msk.f32.mxu0 %vm540_vm0, %v515_v24  ;;  %1808 = vmatprep.mubr.msk.f32.mxu1 %vm540_vm0, %v523_v25 }
 0x154   : > { %1797 = vmatmul.mubr.msk.f32.gmra.mrb[6].mxu0 %vm540_vm0, %v516_v26  ;;  %1809 = vmatmul.mubr.msk.f32.gmra.mrb[6].mxu1 %vm540_vm0, %v524_v27 }
 0x21b   : > { %v1789_v29 = vpop.f32.mrb[0].mxu0  ;;  %v1801_v30 = vpop.f32.mrb[0].mxu1 }
 0x21c   : > { %v661_v31 = vadd.f32 %v1789_v29, %v1654_v28  ;;  %v701_v32 = vadd.f32 %v1801_v30, %v1654_v28  ;;  %v655_v33 = vpop.f32.mrb[1].mxu0  ;;  %v695_v34 = vpop.f32.mrb[1].mxu1 }
 0x21d   : > { %v656_v35 = vadd.f32 %v1654_v28, %v655_v33  ;;  %v696_v36 = vadd.f32 %v1654_v28, %v695_v34 }
 0x21e   : > { %735 = vst [vmem:[#allocation2 + $0x8] sm:$0xff] %v661_v31  ;;  %743 = vst [vmem:[#allocation2 + $0x48] sm:$0xff] %v701_v32 }
 0x21f   : > { %734 = vst [vmem:[#allocation2] sm:$0xff] %v656_v35  ;;  %742 = vst [vmem:[#allocation2 + $0x40] sm:$0xff] %v696_v36  ;;  %v1792_v37 = vpop.f32.mrb[2].mxu0  ;;  %v1804_v38 = vpop.f32.mrb[2].mxu1 }
 0x220   : > { %v671_v39 = vadd.f32 %v1792_v37, %v1654_v28  ;;  %v711_v40 = vadd.f32 %v1804_v38, %v1654_v28  ;;  %v665_v41 = vpop.f32.mrb[3].mxu0  ;;  %v705_v42 = vpop.f32.mrb[3].mxu1 }
 0x221   : > { %v666_v43 = vadd.f32 %v1654_v28, %v665_v41  ;;  %v706_v44 = vadd.f32 %v1654_v28, %v705_v42 }
 0x222   : > { %737 = vst [vmem:[#allocation2 + $0x18] sm:$0xff] %v671_v39  ;;  %745 = vst [vmem:[#allocation2 + $0x58] sm:$0xff] %v711_v40 }
 0x223   : > { %736 = vst [vmem:[#allocation2 + $0x10] sm:$0xff] %v666_v43  ;;  %744 = vst [vmem:[#allocation2 + $0x50] sm:$0xff] %v706_v44  ;;  %v1795_v45 = vpop.f32.mrb[4].mxu0  ;;  %v1807_v46 = vpop.f32.mrb[4].mxu1 }
 0x224   : > { %v681_v47 = vadd.f32 %v1795_v45, %v1654_v28  ;;  %v721_v48 = vadd.f32 %v1807_v46, %v1654_v28  ;;  %v675_v49 = vpop.f32.mrb[5].mxu0  ;;  %v715_v50 = vpop.f32.mrb[5].mxu1 }
 0x225   : > { %v676_v51 = vadd.f32 %v1654_v28, %v675_v49  ;;  %v716_v52 = vadd.f32 %v1654_v28, %v715_v50 }
 0x226   : > { %739 = vst [vmem:[#allocation2 + $0x28] sm:$0xff] %v681_v47  ;;  %747 = vst [vmem:[#allocation2 + $0x68] sm:$0xff] %v721_v48 }
 0x227   : > { %738 = vst [vmem:[#allocation2 + $0x20] sm:$0xff] %v676_v51  ;;  %746 = vst [vmem:[#allocation2 + $0x60] sm:$0xff] %v716_v52  ;;  %v1798_v53 = vpop.f32.mrb[6].mxu0  ;;  %v1810_v54 = vpop.f32.mrb[6].mxu1 }
 0x228   : > { %v691_v55 = vadd.f32 %v1798_v53, %v1654_v28  ;;  %v731_v56 = vadd.f32 %v1810_v54, %v1654_v28  ;;  %v685_v57 = vpop.f32.mrb[7].mxu0  ;;  %v725_v58 = vpop.f32.mrb[7].mxu1 }
 0x229   : > { %v686_v59 = vadd.f32 %v1654_v28, %v685_v57  ;;  %v726_v60 = vadd.f32 %v1654_v28, %v725_v58 }
 0x22a   : > { %741 = vst [vmem:[#allocation2 + $0x38] sm:$0xff] %v691_v55  ;;  %749 = vst [vmem:[#allocation2 + $0x78] sm:$0xff] %v731_v56 }
 0x22b   : > { %740 = vst [vmem:[#allocation2 + $0x30] sm:$0xff] %v686_v59  ;;  %748 = vst [vmem:[#allocation2 + $0x70] sm:$0xff] %v726_v60 }
 0x22c PF: > { %v2073_v61 = vld [vmem:[%s2983_s17] sm:$0xff]   ;;  %v2074_v62 = vld [vmem:[%s2983_s17 + $0x8] sm:$0xff]   ;;  %v2075_v63 = vld [vmem:[%s2983_s17 + $0x10] sm:$0xff]   ;;  %vm1007_vm1 = vcmask 523264   ;;  %s2490_s15 = smov 64   ;;  %vm1361_vm2 = vcmask 1048064  }
 0x22d   : > { %1120 = vxpose.xlu0.c.b16.start [1/8] %v2073_v61, 128  ;;  %v2081_v0 = vld [vmem:[%s2996_s18] sm:$0xff]   ;;  %v2082_v1 = vld [vmem:[%s2996_s18 + $0x8] sm:$0xff]   ;;  %v2076_v2 = vld [vmem:[%s2983_s17 + $0x18] sm:$0xff]   ;;  %s3351_s22 = sld [smem:[#allocation29_spill]] }
 0x22e   : > { %1843 = vmatprep.subr.bf16.mxu1 %v2081_v0  ;;  %v2083_v3 = vld [vmem:[%s2996_s18 + $0x10] sm:$0xff]   ;;  %v2077_v4 = vld [vmem:[%s2983_s17 + $0x20] sm:$0xff]   ;;  %v2084_v5 = vld [vmem:[%s2996_s18 + $0x18] sm:$0xff]  }
 0x22f   : > { %1844 = vmatpush3.bf16.msra.mxu1 %v2081_v0  ;;  %v2089_v6 = vld [vmem:[%s2990_s11] sm:$0xff]   ;;  %v2090_v7 = vld [vmem:[%s2990_s11 + $0x8] sm:$0xff]   ;;  %v2091_v10 = vld [vmem:[%s2990_s11 + $0x10] sm:$0xff]  }
 0x230   : > { %1845 = vmatprep.subr.bf16.mxu1 %v2082_v1  ;;  %v2078_v8 = vld [vmem:[%s2983_s17 + $0x28] sm:$0xff]   ;;  %1811 = vmatprep.subr.bf16.mxu0 %v2089_v6  ;;  %v2085_v9 = vld [vmem:[%s2996_s18 + $0x20] sm:$0xff]   ;;  %v2079_v11 = vld [vmem:[%s2983_s17 + $0x30] sm:$0xff]  }
 0x231   : > { %1121 = vxpose.xlu0.c.b16.cont [2/8] %v2074_v62, 128  ;;  %1812 = vmatpush3.bf16.msra.mxu0 %v2089_v6  ;;  %v2086_v12 = vld [vmem:[%s2996_s18 + $0x28] sm:$0xff]   ;;  %v2092_v13 = vld [vmem:[%s2990_s11 + $0x18] sm:$0xff]   ;;  %v2097_v14 = vld [vmem:[%s2976_s24] sm:$0xff]  }
 0x232   : > { %1813 = vmatprep.subr.bf16.mxu0 %v2090_v7  ;;  %v2080_v15 = vld [vmem:[%s2983_s17 + $0x38] sm:$0xff]   ;;  %1827 = vmatprep.mubr.bf16.mxu0 %v2097_v14  ;;  %v2087_v16 = vld [vmem:[%s2996_s18 + $0x30] sm:$0xff]   ;;  %v2093_v17 = vld [vmem:[%s2990_s11 + $0x20] sm:$0xff]  }
 0x233   : > { %1846 = vmatpush3.bf16.msra.mxu1 %v2082_v1  ;;  %v2088_v18 = vld [vmem:[%s2996_s18 + $0x38] sm:$0xff]   ;;  %v2094_v19 = vld [vmem:[%s2990_s11 + $0x28] sm:$0xff]   ;;  %v2095_v20 = vld [vmem:[%s2990_s11 + $0x30] sm:$0xff]   ;;  %p1703_p4 = scmp.ne.s32.totalorder %s3351_s22, 1 }
 0x234   : > { %1847 = vmatprep.subr.bf16.mxu1 %v2083_v3  ;;  %v2096_v21 = vld [vmem:[%s2990_s11 + $0x38] sm:$0xff]   ;;  %v2098_v22 = vld [vmem:[%s2976_s24 + $0x8] sm:$0xff]   ;;  %v2099_v23 = vld [vmem:[%s2976_s24 + $0x10] sm:$0xff]  }
 0x235   : > { %1122 = vxpose.xlu0.c.b16.cont [3/8] %v2075_v63, 128  ;;  %1814 = vmatpush3.bf16.msra.mxu0 %v2090_v7  ;;  %v2100_v24 = vld [vmem:[%s2976_s24 + $0x18] sm:$0xff]   ;;  %v2101_v25 = vld [vmem:[%s2976_s24 + $0x20] sm:$0xff]   ;;  %v2102_v26 = vld [vmem:[%s2976_s24 + $0x28] sm:$0xff]  }
 0x236   : > { %1815 = vmatprep.subr.bf16.mxu0 %v2091_v10  ;;  %v2103_v27 = vld [vmem:[%s2976_s24 + $0x30] sm:$0xff]   ;;  %v2104_v28 = vld [vmem:[%s2976_s24 + $0x38] sm:$0xff]   ;;  %v750_v38 = vld [vmem:[#allocation2] sm:$0xff] }
 0x237   : > { %1848 = vmatpush3.bf16.msra.mxu1 %v2083_v3  ;;  %v752_v37 = vld [vmem:[#allocation2 + $0x10] sm:$0xff]  ;;  %v753_v40 = vld [vmem:[#allocation2 + $0x18] sm:$0xff]  ;;  %v751_v46 = vld [vmem:[#allocation2 + $0x8] sm:$0xff] }
 0x238   : > { %1849 = vmatprep.subr.bf16.mxu1 %v2084_v5  ;;  %v756_v49 = vld [vmem:[#allocation2 + $0x30] sm:$0xff]  ;;  %v754_v52 = vld [vmem:[#allocation2 + $0x20] sm:$0xff]  ;;  %v757_v57 = vld [vmem:[#allocation2 + $0x38] sm:$0xff] }
 0x239   : > { %1123 = vxpose.xlu0.c.b16.cont [4/8] %v2076_v2, 128  ;;  %1816 = vmatpush3.bf16.msra.mxu0 %v2091_v10  ;;  %v755_v62 = vld [vmem:[#allocation2 + $0x28] sm:$0xff] }
 0x23a   : > { %1817 = vmatprep.subr.bf16.mxu0 %v2092_v13  ;;  %v759_v14 = vld [vmem:[#allocation2 + $0x48] sm:$0xff] }
 0x23b   : > { %1850 = vmatpush3.bf16.msra.mxu1 %v2084_v5  ;;  %v758_v5 = vld [vmem:[#allocation2 + $0x40] sm:$0xff] }
 0x23c   : > { %1851 = vmatprep.subr.bf16.mxu1 %v2085_v9 }
 0x23d   : > { %1124 = vxpose.xlu0.c.b16.cont [5/8] %v2077_v4, 128  ;;  %1818 = vmatpush3.bf16.msra.mxu0 %v2092_v13  ;;  %v760_v4 = vld [vmem:[#allocation2 + $0x50] sm:$0xff] }
 0x23e   : > { %1819 = vmatprep.subr.bf16.mxu0 %v2093_v17 }
 0x23f   : > { %1852 = vmatpush3.bf16.msra.mxu1 %v2085_v9 }
 0x240   : > { %1853 = vmatprep.subr.bf16.mxu1 %v2086_v12 }
 0x241   : > { %1125 = vxpose.xlu0.c.b16.cont [6/8] %v2078_v8, 128  ;;  %1820 = vmatpush3.bf16.msra.mxu0 %v2093_v17 }
 0x242   : > { %1821 = vmatprep.subr.bf16.mxu0 %v2094_v19 }
 0x243   : > { %1854 = vmatpush3.bf16.msra.mxu1 %v2086_v12 }
 0x244   : > { %1855 = vmatprep.subr.bf16.mxu1 %v2087_v16 }
 0x245   : > { %1126 = vxpose.xlu0.c.b16.cont [7/8] %v2079_v11, 128  ;;  %1822 = vmatpush3.bf16.msra.mxu0 %v2094_v19  ;;  %v761_v11 = vld [vmem:[#allocation2 + $0x58] sm:$0xff] }
 0x246   : > { %1823 = vmatprep.subr.bf16.mxu0 %v2095_v20 }
 0x247   : > { %1856 = vmatpush3.bf16.msra.mxu1 %v2087_v16 }
 0x248   : > { %1857 = vmatprep.subr.bf16.mxu1 %v2088_v18 }
 0x249   : > { %1127 = vxpose.xlu0.c.b16.end [8/8] %v2080_v15, 128  ;;  %1824 = vmatpush3.bf16.msra.mxu0 %v2095_v20 }
 0x24a   : > { %1825 = vmatprep.subr.bf16.mxu0 %v2096_v21 }
 0x24b   : > { %1858 = vmatpush3.bf16.msra.mxu1 %v2088_v18 }
 0x24d   : > { %1826 = vmatpush3.bf16.msra.mxu0 %v2096_v21  ;;  %v764_v21 = vld [vmem:[#allocation2 + $0x70] sm:$0xff] }
 0x250   : > { %1828 = vmatmul.mubr.bf16.vlgmr.msra.gmra.mrb[0].mxu0 %v2098_v22  ;;  %v762_v22 = vld [vmem:[#allocation2 + $0x60] sm:$0xff] }
 0x251   : > { %1831 = vmatprep.mubr.bf16.mxu0 %v2099_v23 }
 0x258   : > { %1832 = vmatmul.mubr.bf16.gmra.mrb[4].mxu0 %v2100_v24 }
 0x259   : > { %1835 = vmatprep.mubr.bf16.mxu0 %v2101_v25 }
 0x260   : > { %1836 = vmatmul.mubr.bf16.gmra.mrb[8].mxu0 %v2102_v26 }
 0x261   : > { %1839 = vmatprep.mubr.bf16.mxu0 %v2103_v27 }
 0x268   : > { %1840 = vmatmul.mubr.bf16.gmra.mrb[12].mxu0 %v2104_v28  ;;  %v763_v28 = vld [vmem:[#allocation2 + $0x68] sm:$0xff] }
 0x293   : > { %v1128_v29 = vpop.trf.xlu0 }
 0x294   : > { %1859 = vmatprep.mubr.bf16.mxu1 %v1128_v29 }
 0x297   : > { %v1129_v30 = vpop.trf.xlu0 }
 0x298   : > { %1860 = vmatmul.mubr.bf16.vlgmr.msra.gmra.mrb[0].mxu1 %v1129_v30  ;;  %v765_v30 = vld [vmem:[#allocation2 + $0x78] sm:$0xff] }
 0x29b   : > { %v1130_v31 = vpop.trf.xlu0 }
 0x29c   : > { %1863 = vmatprep.mubr.bf16.mxu1 %v1130_v31 }
 0x29f   : > { %v1131_v32 = vpop.trf.xlu0 }
 0x2a0   : > { %1864 = vmatmul.mubr.bf16.gmra.mrb[4].mxu1 %v1131_v32 }
 0x2a3   : > { %v1132_v33 = vpop.trf.xlu0 }
 0x2a4   : > { %1867 = vmatprep.mubr.bf16.mxu1 %v1132_v33 }
 0x2a7   : > { %v1133_v34 = vpop.trf.xlu0 }
 0x2a8   : > { %1868 = vmatmul.mubr.bf16.gmra.mrb[8].mxu1 %v1133_v34 }
 0x2ab   : > { %v1134_v35 = vpop.trf.xlu0 }
 0x2ac   : > { %1871 = vmatprep.mubr.bf16.mxu1 %v1134_v35 }
 0x2af   : > { %v1135_v36 = vpop.trf.xlu0 }
 0x2b0   : > { %1872 = vmatmul.mubr.bf16.gmra.mrb[12].mxu1 %v1135_v36 }
 0x323   : > { %v1829_v39 = vpop.f32.mrb[0].mxu0 }
 0x324   : > { %v993_v41 = vadd.f32 %v1829_v39, %v752_v37  ;;  %v928_v42 = vpop.f32.mrb[1].mxu0 }
 0x325   : > { %v991_v43 = vadd.f32 %v928_v42, %v750_v38  ;;  %v1830_v44 = vpop.f32.mrb[2].mxu0 }
 0x326   : > { %1010 = vst.msk [vmem:[#allocation2 + $0x10] sm:$0xff] %vm1007_vm1, %v993_v41  ;;  %v994_v45 = vadd.f32 %v1830_v44, %v753_v40  ;;  %v931_v47 = vpop.f32.mrb[3].mxu0 }
 0x327   : > { %1008 = vst.msk [vmem:[#allocation2] sm:$0xff] %vm1007_vm1, %v991_v43  ;;  %v992_v48 = vadd.f32 %v931_v47, %v751_v46 }
 0x328   : > { %1011 = vst.msk [vmem:[#allocation2 + $0x18] sm:$0xff] %vm1007_vm1, %v994_v45 }
 0x329   : > { %1009 = vst.msk [vmem:[#allocation2 + $0x8] sm:$0xff] %vm1007_vm1, %v992_v48 }
 0x32b   : > { %v1833_v50 = vpop.f32.mrb[4].mxu0 }
 0x32c   : > { %v997_v51 = vadd.f32 %v1833_v50, %v756_v49  ;;  %v944_v53 = vpop.f32.mrb[5].mxu0 }
 0x32d   : > { %v995_v54 = vadd.f32 %v944_v53, %v754_v52  ;;  %v1834_v58 = vpop.f32.mrb[6].mxu0  ;;  %v1026_v37 = vld [vmem:[#allocation2 + $0x10] sm:$0xff] }
 0x32e   : > { %1014 = vst.msk [vmem:[#allocation2 + $0x30] sm:$0xff] %vm1007_vm1, %v997_v51  ;;  %v998_v60 = vadd.f32 %v1834_v58, %v757_v57  ;;  %v947_v63 = vpop.f32.mrb[7].mxu0  ;;  %v1024_v40 = vld [vmem:[#allocation2] sm:$0xff] }
 0x32f   : > { %1012 = vst.msk [vmem:[#allocation2 + $0x20] sm:$0xff] %vm1007_vm1, %v995_v54  ;;  %v996_v0 = vadd.f32 %v947_v63, %v755_v62  ;;  %v1027_v43 = vld [vmem:[#allocation2 + $0x18] sm:$0xff] }
 0x330   : > { %1015 = vst.msk [vmem:[#allocation2 + $0x38] sm:$0xff] %vm1007_vm1, %v998_v60  ;;  %v1025_v46 = vld [vmem:[#allocation2 + $0x8] sm:$0xff] }
 0x331   : > { %1013 = vst.msk [vmem:[#allocation2 + $0x28] sm:$0xff] %vm1007_vm1, %v996_v0 }
 0x333   : > { %v1837_v2 = vpop.f32.mrb[8].mxu0 }
 0x334   : > { %v960_v6 = vpop.f32.mrb[9].mxu0  ;;  %v1001_v8 = vadd.f32 %v1837_v2, %v760_v4 }
 0x335   : > { %v999_v9 = vadd.f32 %v960_v6, %v758_v5  ;;  %v1838_v12 = vpop.f32.mrb[10].mxu0  ;;  %v1030_v49 = vld [vmem:[#allocation2 + $0x30] sm:$0xff] }
 0x336   : > { %1018 = vst.msk [vmem:[#allocation2 + $0x50] sm:$0xff] %vm1007_vm1, %v1001_v8  ;;  %v1002_v13 = vadd.f32 %v1838_v12, %v761_v11  ;;  %v963_v15 = vpop.f32.mrb[11].mxu0  ;;  %v1028_v54 = vld [vmem:[#allocation2 + $0x20] sm:$0xff] }
 0x337   : > { %1016 = vst.msk [vmem:[#allocation2 + $0x40] sm:$0xff] %vm1007_vm1, %v999_v9  ;;  %v1000_v16 = vadd.f32 %v963_v15, %v759_v14  ;;  %v1031_v58 = vld [vmem:[#allocation2 + $0x38] sm:$0xff] }
 0x338   : > { %1019 = vst.msk [vmem:[#allocation2 + $0x58] sm:$0xff] %vm1007_vm1, %v1002_v13  ;;  %v1029_v63 = vld [vmem:[#allocation2 + $0x28] sm:$0xff] }
 0x339   : > { %1017 = vst.msk [vmem:[#allocation2 + $0x48] sm:$0xff] %vm1007_vm1, %v1000_v16 }
 0x33b   : > { %v1841_v19 = vpop.f32.mrb[12].mxu0 }
 0x33c   : > { %v976_v23 = vpop.f32.mrb[13].mxu0  ;;  %v1005_v25 = vadd.f32 %v1841_v19, %v764_v21 }
 0x33d   : > { %v1003_v26 = vadd.f32 %v976_v23, %v762_v22  ;;  %v1842_v27 = vpop.f32.mrb[14].mxu0  ;;  %v1034_v5 = vld [vmem:[#allocation2 + $0x50] sm:$0xff] }
 0x33e   : > { %1022 = vst.msk [vmem:[#allocation2 + $0x70] sm:$0xff] %vm1007_vm1, %v1005_v25  ;;  %v979_v29 = vpop.f32.mrb[15].mxu0  ;;  %v1006_v32 = vadd.f32 %v1842_v27, %v765_v30  ;;  %v1032_v50 = vld [vmem:[#allocation2 + $0x40] sm:$0xff] }
 0x33f   : > { %1020 = vst.msk [vmem:[#allocation2 + $0x60] sm:$0xff] %vm1007_vm1, %v1003_v26  ;;  %v1004_v31 = vadd.f32 %v979_v29, %v763_v28  ;;  %v1035_v9 = vld [vmem:[#allocation2 + $0x58] sm:$0xff] }
 0x340   : > { %1023 = vst.msk [vmem:[#allocation2 + $0x78] sm:$0xff] %vm1007_vm1, %v1006_v32  ;;  %v1033_v13 = vld [vmem:[#allocation2 + $0x48] sm:$0xff] }
 0x341   : > { %1021 = vst.msk [vmem:[#allocation2 + $0x68] sm:$0xff] %vm1007_vm1, %v1004_v31 }
 0x347   : > { %v1039_v19 = vld [vmem:[#allocation2 + $0x78] sm:$0xff] }
 0x348   : > { %v1037_v15 = vld [vmem:[#allocation2 + $0x68] sm:$0xff] }
 0x36b   : > { %v1861_v55 = vpop.f32.mrb[0].mxu1 }
 0x36c   : > { %1301 = vrot.lane.b32.xlu1 %v1861_v55, %s2490_s15  ;;  %v1218_v56 = vpop.f32.mrb[1].mxu1 }
 0x36d   : > { %v1862_v59 = vpop.f32.mrb[2].mxu1 }
 0x36e   : > { %v1221_v61 = vpop.f32.mrb[3].mxu1 }
 0x370   : > { %1297 = vrot.lane.b32.xlu1 %v1218_v56, %s2490_s15 }
 0x373   : > { %v1865_v1 = vpop.f32.mrb[4].mxu1 }
 0x374   : > { %1303 = vrot.lane.b32.xlu1 %v1862_v59, %s2490_s15  ;;  %v1234_v3 = vpop.f32.mrb[5].mxu1  ;;  %v1036_v59 = vld [vmem:[#allocation2 + $0x60] sm:$0xff] }
 0x375   : > { %v1866_v7 = vpop.f32.mrb[6].mxu1 }
 0x376   : > { %v1237_v10 = vpop.f32.mrb[7].mxu1 }
 0x378   : > { %1299 = vrot.lane.b32.xlu1 %v1221_v61, %s2490_s15 }
 0x37b   : > { %v1869_v17 = vpop.f32.mrb[8].mxu1 }
 0x37c   : > { %1309 = vrot.lane.b32.xlu1 %v1865_v1, %s2490_s15  ;;  %v1250_v18 = vpop.f32.mrb[9].mxu1  ;;  %v1038_v1 = vld [vmem:[#allocation2 + $0x70] sm:$0xff] }
 0x37d   : > { %v1870_v20 = vpop.f32.mrb[10].mxu1  ;;  %1313 = vrot.lane.b32.xlu0 %v1250_v18, %s2490_s15 }
 0x37e   : > { %v1253_v24 = vpop.f32.mrb[11].mxu1 }
 0x380   : > { %1305 = vrot.lane.b32.xlu1 %v1234_v3, %s2490_s15 }
 0x383   : > { %v1873_v33 = vpop.f32.mrb[12].mxu1 }
 0x384   : > { %1311 = vrot.lane.b32.xlu1 %v1866_v7, %s2490_s15  ;;  %v1266_v34 = vpop.f32.mrb[13].mxu1 }
 0x385   : > { %1321 = vrot.lane.b32.xlu0 %v1266_v34, %s2490_s15  ;;  %v1874_v35 = vpop.f32.mrb[14].mxu1 }
 0x386   : > { %v1269_v36 = vpop.f32.mrb[15].mxu1 }
 0x388   : > { %1307 = vrot.lane.b32.xlu1 %v1237_v10, %s2490_s15 }
 0x389   : > { %1325 = vrot.lane.b32.xlu0 %v1873_v33, %s2490_s15 }
 0x38c   : > { %1317 = vrot.lane.b32.xlu1 %v1869_v17, %s2490_s15 }
 0x390   : > { %1319 = vrot.lane.b32.xlu1 %v1870_v20, %s2490_s15 }
 0x394   : > { %1315 = vrot.lane.b32.xlu1 %v1253_v24, %s2490_s15 }
 0x398   : > { %1323 = vrot.lane.b32.xlu1 %v1269_v36, %s2490_s15 }
 0x39c   : > { %1327 = vrot.lane.b32.xlu1 %v1874_v35, %s2490_s15 }
 0x3de   : > { %v1302_v38 = vpop.permute.xlu1 %1301 }
 0x3df   : > { %v1347_v39 = vadd.f32 %v1302_v38, %v1026_v37 }
 0x3e1   : > { %1364 = vst.msk [vmem:[#allocation2 + $0x10] sm:$0xff] %vm1361_vm2, %v1347_v39 }
 0x3e2   : > { %v1298_v41 = vpop.permute.xlu1 %1297 }
 0x3e3   : > { %v1345_v42 = vadd.f32 %v1298_v41, %v1024_v40 }
 0x3e5   : > { %1362 = vst.msk [vmem:[#allocation2] sm:$0xff] %vm1361_vm2, %v1345_v42 }
 0x3e6   : > { %v1304_v44 = vpop.permute.xlu1 %1303 }
 0x3e7   : > { %v1348_v45 = vadd.f32 %v1304_v44, %v1027_v43 }
 0x3e8   : > { %v1384_v23 = vld [vmem:[#allocation2 + $0x10] sm:$0xff] (!%p1703_p4) }
 0x3e9   : > { %1365 = vst.msk [vmem:[#allocation2 + $0x18] sm:$0xff] %vm1361_vm2, %v1348_v45  ;;  %1400 = vst [vmem:[%s3015_s29 + $0x10] sm:$0xff] (!%p1703_p4), %v1384_v23 }
 0x3ea   : > { %v1300_v47 = vpop.permute.xlu1 %1299 }
 0x3eb   : > { %v1346_v48 = vadd.f32 %v1300_v47, %v1025_v46 }
 0x3ec   : > { %v1382_v21 = vld [vmem:[#allocation2] sm:$0xff] (!%p1703_p4) }
 0x3ed   : > { %1363 = vst.msk [vmem:[#allocation2 + $0x8] sm:$0xff] %vm1361_vm2, %v1346_v48  ;;  %1398 = vst [vmem:[%s3015_s29] sm:$0xff] (!%p1703_p4), %v1382_v21 }
 0x3ee   : > { %v1310_v51 = vpop.permute.xlu1 %1309 }
 0x3ef   : > { %v1351_v52 = vadd.f32 %v1310_v51, %v1030_v49  ;;  %v1314_v53 = vpop.permute.xlu0 %1313 }
 0x3f0   : > { %v1353_v55 = vadd.f32 %v1314_v53, %v1032_v50  ;;  %v1385_v24 = vld [vmem:[#allocation2 + $0x18] sm:$0xff] (!%p1703_p4) }
 0x3f1   : > { %1368 = vst.msk [vmem:[#allocation2 + $0x30] sm:$0xff] %vm1361_vm2, %v1351_v52  ;;  %1401 = vst [vmem:[%s3015_s29 + $0x18] sm:$0xff] (!%p1703_p4), %v1385_v24 }
 0x3f2   : > { %v1306_v56 = vpop.permute.xlu1 %1305  ;;  %1370 = vst.msk [vmem:[#allocation2 + $0x40] sm:$0xff] %vm1361_vm2, %v1353_v55 }
 0x3f3   : > { %v1349_v57 = vadd.f32 %v1306_v56, %v1028_v54 }
 0x3f4   : > { %v1383_v22 = vld [vmem:[#allocation2 + $0x8] sm:$0xff] (!%p1703_p4) }
 0x3f5   : > { %1366 = vst.msk [vmem:[#allocation2 + $0x20] sm:$0xff] %vm1361_vm2, %v1349_v57  ;;  %1399 = vst [vmem:[%s3015_s29 + $0x8] sm:$0xff] (!%p1703_p4), %v1383_v22 }
 0x3f6   : > { %v1312_v60 = vpop.permute.xlu1 %1311 }
 0x3f7   : > { %v1352_v61 = vadd.f32 %v1312_v60, %v1031_v58  ;;  %v1322_v62 = vpop.permute.xlu0 %1321 }
 0x3f8   : > { %v1357_v0 = vadd.f32 %v1322_v62, %v1036_v59  ;;  %v1388_v27 = vld [vmem:[#allocation2 + $0x30] sm:$0xff] (!%p1703_p4) }
 0x3f9   : > { %1369 = vst.msk [vmem:[#allocation2 + $0x38] sm:$0xff] %vm1361_vm2, %v1352_v61  ;;  %v1390_v29 = vld [vmem:[#allocation2 + $0x40] sm:$0xff] (!%p1703_p4)  ;;  %1404 = vst [vmem:[%s3015_s29 + $0x30] sm:$0xff] (!%p1703_p4), %v1388_v27 }
 0x3fa   : > { %v1308_v2 = vpop.permute.xlu1 %1307  ;;  %1374 = vst.msk [vmem:[#allocation2 + $0x60] sm:$0xff] %vm1361_vm2, %v1357_v0  ;;  %1406 = vst [vmem:[%s3015_s29 + $0x40] sm:$0xff] (!%p1703_p4), %v1390_v29 }
 0x3fb   : > { %v1350_v3 = vadd.f32 %v1308_v2, %v1029_v63  ;;  %v1326_v4 = vpop.permute.xlu0 %1325 }
 0x3fc   : > { %v1359_v6 = vadd.f32 %v1326_v4, %v1038_v1  ;;  %v1386_v25 = vld [vmem:[#allocation2 + $0x20] sm:$0xff] (!%p1703_p4) }
 0x3fd   : > { %1367 = vst.msk [vmem:[#allocation2 + $0x28] sm:$0xff] %vm1361_vm2, %v1350_v3  ;;  %1402 = vst [vmem:[%s3015_s29 + $0x20] sm:$0xff] (!%p1703_p4), %v1386_v25 }
 0x3fe   : > { %v1318_v7 = vpop.permute.xlu1 %1317  ;;  %1376 = vst.msk [vmem:[#allocation2 + $0x70] sm:$0xff] %vm1361_vm2, %v1359_v6 }
 0x3ff   : > { %v1355_v8 = vadd.f32 %v1318_v7, %v1034_v5 }
 0x400   : > { %v1389_v28 = vld [vmem:[#allocation2 + $0x38] sm:$0xff] (!%p1703_p4) }
 0x401   : > { %1372 = vst.msk [vmem:[#allocation2 + $0x50] sm:$0xff] %vm1361_vm2, %v1355_v8  ;;  %1405 = vst [vmem:[%s3015_s29 + $0x38] sm:$0xff] (!%p1703_p4), %v1389_v28  ;;  %v1394_v33 = vld [vmem:[#allocation2 + $0x60] sm:$0xff] (!%p1703_p4) }
 0x402   : > { %v1320_v10 = vpop.permute.xlu1 %1319  ;;  %1410 = vst [vmem:[%s3015_s29 + $0x60] sm:$0xff] (!%p1703_p4), %v1394_v33 }
 0x403   : > { %v1356_v11 = vadd.f32 %v1320_v10, %v1035_v9 }
 0x404   : > { %v1387_v26 = vld [vmem:[#allocation2 + $0x28] sm:$0xff] (!%p1703_p4) }
 0x405   : > { %1373 = vst.msk [vmem:[#allocation2 + $0x58] sm:$0xff] %vm1361_vm2, %v1356_v11  ;;  %1403 = vst [vmem:[%s3015_s29 + $0x28] sm:$0xff] (!%p1703_p4), %v1387_v26  ;;  %v1396_v35 = vld [vmem:[#allocation2 + $0x70] sm:$0xff] (!%p1703_p4) }
 0x406   : > { %v1316_v12 = vpop.permute.xlu1 %1315  ;;  %1412 = vst [vmem:[%s3015_s29 + $0x70] sm:$0xff] (!%p1703_p4), %v1396_v35 }
 0x407   : > { %v1354_v14 = vadd.f32 %v1316_v12, %v1033_v13 }
 0x408   : > { %v1392_v31 = vld [vmem:[#allocation2 + $0x50] sm:$0xff] (!%p1703_p4) }
 0x409   : > { %1371 = vst.msk [vmem:[#allocation2 + $0x48] sm:$0xff] %vm1361_vm2, %v1354_v14  ;;  %1408 = vst [vmem:[%s3015_s29 + $0x50] sm:$0xff] (!%p1703_p4), %v1392_v31 }
 0x40a   : > { %v1324_v16 = vpop.permute.xlu1 %1323 }
 0x40b   : > { %v1358_v17 = vadd.f32 %v1324_v16, %v1037_v15  ;;  %1381 = sbr.rel (%p1703_p4) target bundleno = 1050 (0x41a), region = 84 }
 0x40c   : > { %v1393_v32 = vld [vmem:[#allocation2 + $0x58] sm:$0xff] (!%p1703_p4) }
 0x40d   : > { %1375 = vst.msk [vmem:[#allocation2 + $0x68] sm:$0xff] %vm1361_vm2, %v1358_v17  ;;  %1409 = vst [vmem:[%s3015_s29 + $0x58] sm:$0xff] (!%p1703_p4), %v1393_v32 }
 0x40e   : > { %v1328_v18 = vpop.permute.xlu1 %1327 }
 0x40f   : > { %v1360_v20 = vadd.f32 %v1328_v18, %v1039_v19 }
 0x410   : > { %v1391_v30 = vld [vmem:[#allocation2 + $0x48] sm:$0xff] (!%p1703_p4) }
 0x411   : > { %1377 = vst.msk [vmem:[#allocation2 + $0x78] sm:$0xff] %vm1361_vm2, %v1360_v20  ;;  %1407 = vst [vmem:[%s3015_s29 + $0x48] sm:$0xff] (!%p1703_p4), %v1391_v30 }
 0x414   : > { %v1395_v34 = vld [vmem:[#allocation2 + $0x68] sm:$0xff] }
 0x415   : > { %1411 = vst [vmem:[%s3015_s29 + $0x68] sm:$0xff] %v1395_v34 }
 0x418   : > { %v1397_v36 = vld [vmem:[#allocation2 + $0x78] sm:$0xff] }
 0x419   : > { %1413 = vst [vmem:[%s3015_s29 + $0x78] sm:$0xff] %v1397_v36 }
 0x41a PF: > { %s3352_s20 = sld [smem:[#allocation30_spill]]  ;;  %s3354_s10 = sld [smem:[#allocation42_spill]] }
 0x41b   : > { %s1428_s23 = sshll.u32 %s3015_s29, 4  ;;  %s3158_s11 = scalar_lea.sflag [#allocation5], %s437_s1  ;;  %s3154_s23 = int_to_ptr.vmem [resolvable:$true] %s1428_s23 }
 0x41c   : > { %s2311_s7 = scalar_lea.vmem %s3154_s23, 2048  ;;  %p3356_p8 = scmp.ne.s32.totalorder %s3333_s30, 0 }
 0x41d   : > { %p2312_p2 = scmp.ne.s32.totalorder %s3154_s23, %s2311_s7  ;;  %s2491_s18 = smov [#allocation15]  }
 0x41e   : > { %s2315_s16 = sshll.u32 %s2491_s18, 4  ;;  %s2316_s16 = int_to_ptr.vmem [resolvable:$false] %s2315_s16 }
 0x41f   : > { %p2313_p7 = pnand %p2312_p2, %p3356_p8  ;;  %s2317_s4 = scalar_lea.vmem %s2316_s16, 4096 }
 0x420   : > { %s1714_s19 = sshll.u32 %s3352_s20, 11  ;;  %s3355_s5 = smov %s3354_s10 }
 0x421   : > { %s3151_s26 = scalar_lea.hbm %s3354_s10, %s1714_s19  ;;  %p2314_p0 = pneg %p2313_p7 }
 0x422   : > { %p2318_p12 = scmp.lt.s32.totalorder %s3154_s23, %s2316_s16  ;;  %p2319_p1 = scmp.lt.s32.totalorder %s2317_s4, %s2311_s7 }
 0x424   : > { %p2320_p9 = por %p2319_p1, %p2318_p12 }
 0x426   : > { %p2321_p11 = pnand %p2320_p9, %p2314_p0 }
 0x428   : > { %2324 = shalt.err (!%p2321_p11)
}
 0x429   : > { %s2325_s1 = scalar_lea.hbm %s3151_s26, 2048  ;;  %s2329_s28 = scalar_lea.hbm %s3355_s5, 4096 }
 0x42a   : > { %p2326_p5 = scmp.ne.s32.totalorder %s3151_s26, %s2325_s1  ;;  %p2330_p6 = scmp.lt.u32.totalorder %s3151_s26, %s3355_s5 }
 0x42b   : > { %p2331_p3 = scmp.lt.u32.totalorder %s2329_s28, %s2325_s1  ;;  %p2333_p2 = scmp.lt.u32.totalorder %s2325_s1, %s3151_s26 }
 0x42c   : > { %p2327_p10 = pnand %p2326_p5, %p3356_p8 }
 0x42d   : > { %p2332_p4 = por %p2331_p3, %p2330_p6 }
 0x42e   : > { %p2328_p13 = pneg %p2327_p10 }
 0x42f   : > { %p2334_p7 = por %p2333_p2, %p2332_p4 }
 0x431   : > { %p2335_p0 = pnand %p2334_p7, %p2328_p13 }
 0x433   : > { %2338 = shalt.err (!%p2335_p0)
}
 0x434   : > { %s2492_s20 = smov 128   ;;  %s2493_s24 = smov 8  }
 0x435   : > { %1917 = dma.vmem_to_hbm [thread:$0]  (%p3356_p8), %s3154_s23, 2048, %s3151_s26, %s3158_s11, %s2492_s20, %s2492_s20, %s2493_s24  }
 0x436 PF: > { %s3357_s19 = sld [smem:[#allocation23_spill]]  ;;  %p1951_p12 = scmp.ge.s32.totalorder %s2477_s14, 2 }
 0x437   : > { %p3358_p1 = scmp.ne.s32.totalorder %s3334_s25, 0 }
 0x439   : > { %p1943_p9 = pnand %p1951_p12, %p3358_p1 }
 0x43c   : > { %s1443_s27 = sand.u32 1, %s3357_s19  }
 0x43d   : > { %s1444_s17 = scalar_lea.sflag [#allocation5], %s1443_s27 }
 0x43e   : > { %2420 = dma.done.wait (!%p1943_p9), %s1444_s17, 2048  }
 0x43f   : > { %2422 = vsyncadd (!%p1943_p9), %s1444_s17, 4294965248  ;;  %s30_s14 = sadd.s32 1, %s2477_s14   ;;  %s3360_s24 = sld [smem:[#allocation24_spill]] }
 0x440   : > { %p3187_p11 = scmp.ge.s32.totalorder %s30_s14, 6   ;;  %s3361_s25 = sld [smem:[#allocation25_spill]] }
 0x441   : > { %s3362_s27 = sld [smem:[#allocation26_spill]]  ;;  %s3363_s28 = sld [smem:[#allocation27_spill]] }
 0x442   : > { %s3364_s29 = sld [smem:[#allocation36_spill]]  ;;  %s3365_s30 = sld [smem:[#allocation28_spill]] }
 0x443   : > { %s3366_s23 = sld [smem:[#allocation35_spill]]  ;;  %s3367_s7 = sld [smem:[#allocation32_spill]] }
 0x444   : > { %s3368_s18 = sld [smem:[#allocation33_spill]]  ;;  %s3370_s26 = smov %s2909_s8 }
 0x445   : > { %s3371_s8 = smov %s2457_s9  ;;  %s3373_s10 = smov %s2469_s12 }
 0x446   : > { %s3374_s11 = smov %s2473_s13  ;;  %29 = sbr.rel (!%p3187_p11) target bundleno = 21 (0x15), region = 157 }
 0x449   : > { %s3372_s9 = smov %s3366_s23  ;;  %s3375_s12 = smov %s3367_s7 }
 0x44a   : > { %s3376_s13 = smov %s3368_s18 }
 0x44d   :  { %1449 = vsyncpa [#allocation4], 1 }
 0x44e   :  { %1451 = vsyncpa [#allocation4 + $0x1], 1 }
 0x44f   :  { %1452 = vsyncpa [#allocation7], 1 }
 0x450   :  { %1454 = vsyncpa [#allocation7 + $0x1], 1 }
 0x451   :  { %1455 = vsyncpa [#allocation10], 1 }
 0x452   :  { %1457 = vsyncpa [#allocation10 + $0x1], 1 }
 0x453   :  { %1458 = vsyncpa [#allocation13], 1 }
 0x454   :  { %1459 = vsyncpa [#allocation5], 1 }
 0x455   :  { %1461 = vsyncpa [#allocation5 + $0x1], 1 }

</bundles_post_ra>
